<compile_context>
chip_gen: v7x
topology: tpu7x:2x2x1
jax: 0.10.0
libtpu: 0.0.40
codegen_flags: <defaults>
</compile_context>

<pallas_src>
import functools

import jax
import jax.numpy as jnp
from jax.experimental import pallas as pl
from jax.experimental.pallas import tpu as pltpu


def _qmha_kernel(H, Hd, C,
                 sw_ref,                                   # scalar-prefetch: (H,H) in SMEM
                 x_ref, wq_ref, wk_ref, wv_ref,
                 bq_ref, bk_ref, bv_ref,
                 em_ref, wp3_ref, bp_ref, o_ref):
    f32 = jnp.float32
    bf16 = jnp.bfloat16
    N = x_ref.shape[1]

    # ---- Q/K/V projections: full-width MXU matmuls, bf16 operands, f32 accumulate ----
    xb = x_ref[0].astype(bf16)                                         # (N, C)
    q2 = jnp.dot(xb, wq_ref[...], preferred_element_type=f32) + bq_ref[...]   # (N, C) f32
    k2 = jnp.dot(xb, wk_ref[...], preferred_element_type=f32) + bk_ref[...]   # (N, C) f32
    v2 = jnp.dot(xb, wv_ref[...], preferred_element_type=f32) + bv_ref[...]   # (N, C) f32

    # ---- Per-head attention logits: H small (N,Hd)x(Hd,N) contractions ----
    # (static column slices of the full-width projections; f32 here — at Hd=3 the MXU
    #  gain from bf16 is nil and the logits feed the precision-sensitive tanh/softmax.)
    attn = []
    for h in range(H):
        sl = slice(h * Hd, (h + 1) * Hd)
        attn.append(jnp.einsum('qd,kd->qk', q2[:, sl], k2[:, sl],
                               preferred_element_type=f32))            # (N, N)

    # ---- Superposition mix: sup[i] = sum_j (scale*SW[i,j]) * attn[j] ----
    # scale is folded into sw in the wrapper; coefficients are SMEM scalars, so the mix
    # is (H+1)*H tiny VPU passes over single-vreg (N,N) maps (equivalent FLOPs to the
    # (H+1,H) MXU mix suggested in the review; at production N it would be a matmul).
    sup = []
    for i in range(H):
        acc = sw_ref[i, 0] * attn[0]
        for j in range(1, H):
            acc = acc + sw_ref[i, j] * attn[j]
        sup.append(acc)
    s_sum = sup[0]
    for i in range(1, H):
        s_sum = s_sum + sup[i]                                         # (N, N) = sum_i sup[i]

    # ---- Entanglement + softmax + AV + output projection, per head ----
    em = em_ref[...]                                                   # (H, H) == (H, N)
    y = jnp.zeros((N, C), f32)
    for h in range(H):
        # em[h, k] broadcasts along the key axis (requires H == N, as in PyTorch).
        ent = jnp.tanh(sup[h] + em[h:h + 1, :] * s_sum)                # (N, N), in [-1, 1]
        e = jnp.exp(ent)                         # no max-subtraction: tanh bounds the logits
        p = e * pl.reciprocal(jnp.sum(e, axis=-1, keepdims=True), approx=True)
        vh = v2[:, h * Hd:(h + 1) * Hd].astype(bf16)                   # (N, Hd)
        oh = jnp.dot(p.astype(bf16), vh, preferred_element_type=f32)   # (N, Hd) f32
        y = y + jnp.dot(oh.astype(bf16), wp3_ref[h],
                        preferred_element_type=f32)                    # (N, C) f32

    o_ref[0] = (y + bp_ref[...]).astype(o_ref.dtype)


def quantum_mha_forward(x, w_qkv, b_qkv, w_proj, b_proj, sw, em, num_heads):
    """x: (B, N, C); w_qkv: (3C, C); w_proj: (C, C); sw/em: (H, H)."""
    B, N, C = x.shape
    H = num_heads
    assert C % H == 0
    Hd = C // H
    assert H == N, ("PyTorch broadcast in the entanglement step requires "
                    "num_heads == sequence length")
    scale = Hd ** (-0.5)

    bf16 = jnp.bfloat16
    f32 = jnp.float32

    # F.linear computes x @ W^T + b, so pass W^T (in_features, out_features).
    wt = w_qkv.T                                                       # (C, 3C)
    wq = wt[:, :C].astype(bf16)                                        # (C, C)
    wk = wt[:, C:2 * C].astype(bf16)                                   # (C, C)
    wv = wt[:, 2 * C:].astype(bf16)                                    # (C, C)
    bq = b_qkv[:C].reshape(1, C).astype(f32)
    bk = b_qkv[C:2 * C].reshape(1, C).astype(f32)
    bv = b_qkv[2 * C:].reshape(1, C).astype(f32)
    sw_s = (sw * scale).astype(f32)                                    # (H, H) -> SMEM
    em_f = em.astype(f32)                                              # (H, H)
    # Output projection split per head: wp3[h, d, c] = W_p^T[h*Hd + d, c].
    wp3 = w_proj.T.reshape(H, Hd, C).astype(bf16)                      # (H, Hd, C)
    bp = b_proj.reshape(1, C).astype(f32)

    kernel = functools.partial(_qmha_kernel, H, Hd, C)

    def const2(b, *_):
        return (0, 0)

    def const3(b, *_):
        return (0, 0, 0)

    grid_spec = pltpu.PrefetchScalarGridSpec(
        num_scalar_prefetch=1,                  # sw_s -> SMEM, scalar-indexed in the mix
        grid=(B,),                              # batch purely on the grid (bt = 1)
        in_specs=[
            pl.BlockSpec((1, N, C), lambda b, *_: (b, 0, 0)),          # x
            pl.BlockSpec((C, C), const2),                              # Wq^T
            pl.BlockSpec((C, C), const2),                              # Wk^T
            pl.BlockSpec((C, C), const2),                              # Wv^T
            pl.BlockSpec((1, C), const2),                              # bq
            pl.BlockSpec((1, C), const2),                              # bk
            pl.BlockSpec((1, C), const2),                              # bv
            pl.BlockSpec((H, H), const2),                              # entanglement matrix
            pl.BlockSpec((H, Hd, C), const3),                          # Wp^T per head
            pl.BlockSpec((1, C), const2),                              # bp
        ],
        out_specs=pl.BlockSpec((1, N, C), lambda b, *_: (b, 0, 0)),
    )

    return pl.pallas_call(
        kernel,
        out_shape=jax.ShapeDtypeStruct((B, N, C), jnp.float32),
        grid_spec=grid_spec,
        compiler_params=pltpu.CompilerParams(
            dimension_semantics=("parallel",),
            vmem_limit_bytes=32 * 1024 * 1024),
    )(sw_s, x, wq, wk, wv, bq, bk, bv, em_f, wp3, bp)


# ----------------------------- glue (plain JAX) -----------------------------

def phm_weight(A, S):
    """W = sum_i kron(A[i], S[i]).  A: (n, n, n), S: (n, out//n, in//n)."""
    n, out_per, in_per = A.shape[0], S.shape[1], S.shape[2]
    W = jnp.einsum('ipq,irs->prqs', A, S)
    return W.reshape(n * out_per, n * in_per)


def reference_forward(x, w_qkv, b_qkv, w_proj, b_proj, sw, em, num_heads):
    """Pure-JAX f32 mirror of the PyTorch forward (for verification)."""
    B, N, C = x.shape
    H = num_heads
    Hd = C // H
    scale = Hd ** (-0.5)
    qkv = x @ w_qkv.T + b_qkv                                          # (B, N, 3C)
    qkv = qkv.reshape(B, N, 3, H, Hd).transpose(2, 0, 3, 1, 4)
    q, k, v = qkv[0], qkv[1], qkv[2]                                   # (B, H, N, Hd)
    attn = jnp.einsum('bhqd,bhkd->bhqk', q, k) * scale
    sup = jnp.einsum('ij,bjqk->biqk', sw, attn)
    ent = jnp.tanh(sup + em[None, :, None, :] *
                   jnp.sum(sup, axis=1, keepdims=True))
    p = jax.nn.softmax(ent, axis=-1)
    o = jnp.einsum('bhqk,bhkd->bhqd', p, v)
    o = o.transpose(0, 2, 1, 3).reshape(B, N, C)
    return o @ w_proj.T + b_proj


if __name__ == "__main__":
    key = jax.random.PRNGKey(0)
    B, N = 2, 8
    num_heads = 8          # must equal N (see layout note at top)
    n = 3
    dim = 24               # divisible by num_heads (8) and by n (3)

    ks = jax.random.split(key, 9)
    x = jax.random.normal(ks[0], (B, N, dim), jnp.float32)

    # Deterministic synthetic parameters (shapes implied by the module).
    A_qkv = jax.random.normal(ks[1], (n, n, n), jnp.float32) * 0.5
    S_qkv = jax.random.normal(ks[2], (n, (dim * 3) // n, dim // n),
                              jnp.float32) * 0.2
    b_qkv = jax.random.normal(ks[3], (dim * 3,), jnp.float32) * 0.02
    A_p = jax.random.normal(ks[4], (n, n, n), jnp.float32) * 0.5
    S_p = jax.random.normal(ks[5], (n, dim // n, dim // n), jnp.float32) * 0.2
    b_p = jax.random.normal(ks[6], (dim,), jnp.float32) * 0.02
    sw = jax.random.normal(ks[7], (num_heads, num_heads), jnp.float32) * 0.5
    em = jax.random.normal(ks[8], (num_heads, num_heads), jnp.float32) * 0.5

    w_qkv = phm_weight(A_qkv, S_qkv)   # (3*dim, dim)
    w_proj = phm_weight(A_p, S_p)      # (dim, dim)

    out = quantum_mha_forward(x, w_qkv, b_qkv, w_proj, b_p, sw, em, num_heads)
    out = jax.block_until_ready(out)

    ref = reference_forward(x, w_qkv, b_qkv, w_proj, b_p, sw, em, num_heads)
    assert out.shape == (B, N, dim)
    # Tolerance accounts for bf16 MXU operands (f32 accumulate), the EUP approximate
    # reciprocal in the softmax, and reassociated f32 reductions vs the f32 reference.
    if not jnp.allclose(out, ref, atol=3e-2, rtol=3e-2):
        raise AssertionError(
            f"mismatch vs reference, max abs err = {jnp.max(jnp.abs(out - ref))}")
    print("KERNEL_OK")
</pallas_src>

<mosaic_0001>
module attributes {stable_mosaic.version = 11 : i64} {
  func.func @_qmha_kernel(%arg0: i32, %arg1: memref<8x8xf32, #tpu.memory_space<smem>>, %arg2: memref<1x8x24xf32, #tpu.memory_space<vmem>>, %arg3: memref<24x24xbf16, #tpu.memory_space<vmem>>, %arg4: memref<24x24xbf16, #tpu.memory_space<vmem>>, %arg5: memref<24x24xbf16, #tpu.memory_space<vmem>>, %arg6: memref<1x24xf32, #tpu.memory_space<vmem>>, %arg7: memref<1x24xf32, #tpu.memory_space<vmem>>, %arg8: memref<1x24xf32, #tpu.memory_space<vmem>>, %arg9: memref<8x8xf32, #tpu.memory_space<vmem>>, %arg10: memref<8x3x24xbf16, #tpu.memory_space<vmem>>, %arg11: memref<1x24xf32, #tpu.memory_space<vmem>>, %arg12: memref<1x8x24xf32, #tpu.memory_space<vmem>>) attributes {dimension_semantics = [#tpu.dimension_semantics<parallel>], iteration_bounds = array<i64: 2>, scalar_prefetch = 1 : i64, scratch_operands = 0 : i64, tpu.core_type = #tpu.core_type<tc>, window_params = [{transform_indices = @transform_0, window_bounds = array<i64: 1, 8, 24>}, {pipeline_mode = #tpu.pipeline_mode<synchronous>, transform_indices = @transform_1, window_bounds = array<i64: 24, 24>}, {pipeline_mode = #tpu.pipeline_mode<synchronous>, transform_indices = @transform_2, window_bounds = array<i64: 24, 24>}, {pipeline_mode = #tpu.pipeline_mode<synchronous>, transform_indices = @transform_3, window_bounds = array<i64: 24, 24>}, {pipeline_mode = #tpu.pipeline_mode<synchronous>, transform_indices = @transform_4, window_bounds = array<i64: 1, 24>}, {pipeline_mode = #tpu.pipeline_mode<synchronous>, transform_indices = @transform_5, window_bounds = array<i64: 1, 24>}, {pipeline_mode = #tpu.pipeline_mode<synchronous>, transform_indices = @transform_6, window_bounds = array<i64: 1, 24>}, {pipeline_mode = #tpu.pipeline_mode<synchronous>, transform_indices = @transform_7, window_bounds = array<i64: 8, 8>}, {pipeline_mode = #tpu.pipeline_mode<synchronous>, transform_indices = @transform_8, window_bounds = array<i64: 8, 3, 24>}, {pipeline_mode = #tpu.pipeline_mode<synchronous>, transform_indices = @transform_9, window_bounds = array<i64: 1, 24>}, {transform_indices = @transform_10, window_bounds = array<i64: 1, 8, 24>}]} {
    %c0 = arith.constant 0 : index
    %c0_0 = arith.constant 0 : index
    %c0_1 = arith.constant 0 : index
    %0 = vector.load %arg2[%c0, %c0_0, %c0_1] : memref<1x8x24xf32, #tpu.memory_space<vmem>>, vector<1x8x24xf32>
    %1 = vector.shape_cast %0 : vector<1x8x24xf32> to vector<8x24xf32>
    %2 = arith.truncf %1 : vector<8x24xf32> to vector<8x24xbf16>
    %c0_2 = arith.constant 0 : index
    %c0_3 = arith.constant 0 : index
    %3 = vector.load %arg3[%c0_2, %c0_3] : memref<24x24xbf16, #tpu.memory_space<vmem>>, vector<24x24xbf16>
    %cst = arith.constant dense<0.000000e+00> : vector<8x24xf32>
    %4 = tpu.matmul %2, %3, %cst {dimension_numbers = #tpu.dot_dimension_numbers<[1], [0], [0], [1], [0, 0, 1, 1], [], []>} : vector<8x24xbf16>, vector<24x24xbf16>, vector<8x24xf32> -> vector<8x24xf32>
    %c0_4 = arith.constant 0 : index
    %c0_5 = arith.constant 0 : index
    %5 = vector.load %arg6[%c0_4, %c0_5] : memref<1x24xf32, #tpu.memory_space<vmem>>, vector<1x24xf32>
    %6 = vector.broadcast %5 : vector<1x24xf32> to vector<8x24xf32>
    %7 = arith.addf %4, %6 : vector<8x24xf32>
    %c0_6 = arith.constant 0 : index
    %c0_7 = arith.constant 0 : index
    %8 = vector.load %arg4[%c0_6, %c0_7] : memref<24x24xbf16, #tpu.memory_space<vmem>>, vector<24x24xbf16>
    %cst_8 = arith.constant dense<0.000000e+00> : vector<8x24xf32>
    %9 = tpu.matmul %2, %8, %cst_8 {dimension_numbers = #tpu.dot_dimension_numbers<[1], [0], [0], [1], [0, 0, 1, 1], [], []>} : vector<8x24xbf16>, vector<24x24xbf16>, vector<8x24xf32> -> vector<8x24xf32>
    %c0_9 = arith.constant 0 : index
    %c0_10 = arith.constant 0 : index
    %10 = vector.load %arg7[%c0_9, %c0_10] : memref<1x24xf32, #tpu.memory_space<vmem>>, vector<1x24xf32>
    %11 = vector.broadcast %10 : vector<1x24xf32> to vector<8x24xf32>
    %12 = arith.addf %9, %11 : vector<8x24xf32>
    %c0_11 = arith.constant 0 : index
    %c0_12 = arith.constant 0 : index
    %13 = vector.load %arg5[%c0_11, %c0_12] : memref<24x24xbf16, #tpu.memory_space<vmem>>, vector<24x24xbf16>
    %cst_13 = arith.constant dense<0.000000e+00> : vector<8x24xf32>
    %14 = tpu.matmul %2, %13, %cst_13 {dimension_numbers = #tpu.dot_dimension_numbers<[1], [0], [0], [1], [0, 0, 1, 1], [], []>} : vector<8x24xbf16>, vector<24x24xbf16>, vector<8x24xf32> -> vector<8x24xf32>
    %c0_14 = arith.constant 0 : index
    %c0_15 = arith.constant 0 : index
    %15 = vector.load %arg8[%c0_14, %c0_15] : memref<1x24xf32, #tpu.memory_space<vmem>>, vector<1x24xf32>
    %16 = vector.broadcast %15 : vector<1x24xf32> to vector<8x24xf32>
    %17 = arith.addf %14, %16 : vector<8x24xf32>
    %18 = vector.extract_strided_slice %7 {offsets = [0, 0], sizes = [8, 3], strides = [1, 1]} : vector<8x24xf32> to vector<8x3xf32>
    %19 = vector.extract_strided_slice %12 {offsets = [0, 0], sizes = [8, 3], strides = [1, 1]} : vector<8x24xf32> to vector<8x3xf32>
    "tpu.trace_start"() <{level = 10 : i32, message = "qd,kd->qk"}> : () -> ()
    %cst_16 = arith.constant dense<0.000000e+00> : vector<8x8xf32>
    %20 = tpu.matmul %18, %19, %cst_16 {dimension_numbers = #tpu.dot_dimension_numbers<[1], [1], [0], [0], [0, 0, 1, 0], [], []>} : vector<8x3xf32>, vector<8x3xf32>, vector<8x8xf32> -> vector<8x8xf32>
    "tpu.trace_stop"() : () -> ()
    %21 = vector.extract_strided_slice %7 {offsets = [0, 3], sizes = [8, 3], strides = [1, 1]} : vector<8x24xf32> to vector<8x3xf32>
    %22 = vector.extract_strided_slice %12 {offsets = [0, 3], sizes = [8, 3], strides = [1, 1]} : vector<8x24xf32> to vector<8x3xf32>
    "tpu.trace_start"() <{level = 10 : i32, message = "qd,kd->qk"}> : () -> ()
    %cst_17 = arith.constant dense<0.000000e+00> : vector<8x8xf32>
    %23 = tpu.matmul %21, %22, %cst_17 {dimension_numbers = #tpu.dot_dimension_numbers<[1], [1], [0], [0], [0, 0, 1, 0], [], []>} : vector<8x3xf32>, vector<8x3xf32>, vector<8x8xf32> -> vector<8x8xf32>
    "tpu.trace_stop"() : () -> ()
    %24 = vector.extract_strided_slice %7 {offsets = [0, 6], sizes = [8, 3], strides = [1, 1]} : vector<8x24xf32> to vector<8x3xf32>
    %25 = vector.extract_strided_slice %12 {offsets = [0, 6], sizes = [8, 3], strides = [1, 1]} : vector<8x24xf32> to vector<8x3xf32>
    "tpu.trace_start"() <{level = 10 : i32, message = "qd,kd->qk"}> : () -> ()
    %cst_18 = arith.constant dense<0.000000e+00> : vector<8x8xf32>
    %26 = tpu.matmul %24, %25, %cst_18 {dimension_numbers = #tpu.dot_dimension_numbers<[1], [1], [0], [0], [0, 0, 1, 0], [], []>} : vector<8x3xf32>, vector<8x3xf32>, vector<8x8xf32> -> vector<8x8xf32>
    "tpu.trace_stop"() : () -> ()
    %27 = vector.extract_strided_slice %7 {offsets = [0, 9], sizes = [8, 3], strides = [1, 1]} : vector<8x24xf32> to vector<8x3xf32>
    %28 = vector.extract_strided_slice %12 {offsets = [0, 9], sizes = [8, 3], strides = [1, 1]} : vector<8x24xf32> to vector<8x3xf32>
    "tpu.trace_start"() <{level = 10 : i32, message = "qd,kd->qk"}> : () -> ()
    %cst_19 = arith.constant dense<0.000000e+00> : vector<8x8xf32>
    %29 = tpu.matmul %27, %28, %cst_19 {dimension_numbers = #tpu.dot_dimension_numbers<[1], [1], [0], [0], [0, 0, 1, 0], [], []>} : vector<8x3xf32>, vector<8x3xf32>, vector<8x8xf32> -> vector<8x8xf32>
    "tpu.trace_stop"() : () -> ()
    %30 = vector.extract_strided_slice %7 {offsets = [0, 12], sizes = [8, 3], strides = [1, 1]} : vector<8x24xf32> to vector<8x3xf32>
    %31 = vector.extract_strided_slice %12 {offsets = [0, 12], sizes = [8, 3], strides = [1, 1]} : vector<8x24xf32> to vector<8x3xf32>
    "tpu.trace_start"() <{level = 10 : i32, message = "qd,kd->qk"}> : () -> ()
    %cst_20 = arith.constant dense<0.000000e+00> : vector<8x8xf32>
    %32 = tpu.matmul %30, %31, %cst_20 {dimension_numbers = #tpu.dot_dimension_numbers<[1], [1], [0], [0], [0, 0, 1, 0], [], []>} : vector<8x3xf32>, vector<8x3xf32>, vector<8x8xf32> -> vector<8x8xf32>
    "tpu.trace_stop"() : () -> ()
    %33 = vector.extract_strided_slice %7 {offsets = [0, 15], sizes = [8, 3], strides = [1, 1]} : vector<8x24xf32> to vector<8x3xf32>
    %34 = vector.extract_strided_slice %12 {offsets = [0, 15], sizes = [8, 3], strides = [1, 1]} : vector<8x24xf32> to vector<8x3xf32>
    "tpu.trace_start"() <{level = 10 : i32, message = "qd,kd->qk"}> : () -> ()
    %cst_21 = arith.constant dense<0.000000e+00> : vector<8x8xf32>
    %35 = tpu.matmul %33, %34, %cst_21 {dimension_numbers = #tpu.dot_dimension_numbers<[1], [1], [0], [0], [0, 0, 1, 0], [], []>} : vector<8x3xf32>, vector<8x3xf32>, vector<8x8xf32> -> vector<8x8xf32>
    "tpu.trace_stop"() : () -> ()
    %36 = vector.extract_strided_slice %7 {offsets = [0, 18], sizes = [8, 3], strides = [1, 1]} : vector<8x24xf32> to vector<8x3xf32>
    %37 = vector.extract_strided_slice %12 {offsets = [0, 18], sizes = [8, 3], strides = [1, 1]} : vector<8x24xf32> to vector<8x3xf32>
    "tpu.trace_start"() <{level = 10 : i32, message = "qd,kd->qk"}> : () -> ()
    %cst_22 = arith.constant dense<0.000000e+00> : vector<8x8xf32>
    %38 = tpu.matmul %36, %37, %cst_22 {dimension_numbers = #tpu.dot_dimension_numbers<[1], [1], [0], [0], [0, 0, 1, 0], [], []>} : vector<8x3xf32>, vector<8x3xf32>, vector<8x8xf32> -> vector<8x8xf32>
    "tpu.trace_stop"() : () -> ()
    %39 = vector.extract_strided_slice %7 {offsets = [0, 21], sizes = [8, 3], strides = [1, 1]} : vector<8x24xf32> to vector<8x3xf32>
    %40 = vector.extract_strided_slice %12 {offsets = [0, 21], sizes = [8, 3], strides = [1, 1]} : vector<8x24xf32> to vector<8x3xf32>
    "tpu.trace_start"() <{level = 10 : i32, message = "qd,kd->qk"}> : () -> ()
    %cst_23 = arith.constant dense<0.000000e+00> : vector<8x8xf32>
    %41 = tpu.matmul %39, %40, %cst_23 {dimension_numbers = #tpu.dot_dimension_numbers<[1], [1], [0], [0], [0, 0, 1, 0], [], []>} : vector<8x3xf32>, vector<8x3xf32>, vector<8x8xf32> -> vector<8x8xf32>
    "tpu.trace_stop"() : () -> ()
    %c0_24 = arith.constant 0 : index
    %c0_25 = arith.constant 0 : index
    %42 = memref.load %arg1[%c0_24, %c0_25] : memref<8x8xf32, #tpu.memory_space<smem>>
    %43 = vector.broadcast %42 : f32 to vector<8x8xf32>
    %44 = arith.mulf %43, %20 : vector<8x8xf32>
    %c0_26 = arith.constant 0 : index
    %c1 = arith.constant 1 : index
    %45 = memref.load %arg1[%c0_26, %c1] : memref<8x8xf32, #tpu.memory_space<smem>>
    %46 = vector.broadcast %45 : f32 to vector<8x8xf32>
    %47 = arith.mulf %46, %23 : vector<8x8xf32>
    %48 = arith.addf %44, %47 : vector<8x8xf32>
    %c0_27 = arith.constant 0 : index
    %c2 = arith.constant 2 : index
    %49 = memref.load %arg1[%c0_27, %c2] : memref<8x8xf32, #tpu.memory_space<smem>>
    %50 = vector.broadcast %49 : f32 to vector<8x8xf32>
    %51 = arith.mulf %50, %26 : vector<8x8xf32>
    %52 = arith.addf %48, %51 : vector<8x8xf32>
    %c0_28 = arith.constant 0 : index
    %c3 = arith.constant 3 : index
    %53 = memref.load %arg1[%c0_28, %c3] : memref<8x8xf32, #tpu.memory_space<smem>>
    %54 = vector.broadcast %53 : f32 to vector<8x8xf32>
    %55 = arith.mulf %54, %29 : vector<8x8xf32>
    %56 = arith.addf %52, %55 : vector<8x8xf32>
    %c0_29 = arith.constant 0 : index
    %c4 = arith.constant 4 : index
    %57 = memref.load %arg1[%c0_29, %c4] : memref<8x8xf32, #tpu.memory_space<smem>>
    %58 = vector.broadcast %57 : f32 to vector<8x8xf32>
    %59 = arith.mulf %58, %32 : vector<8x8xf32>
    %60 = arith.addf %56, %59 : vector<8x8xf32>
    %c0_30 = arith.constant 0 : index
    %c5 = arith.constant 5 : index
    %61 = memref.load %arg1[%c0_30, %c5] : memref<8x8xf32, #tpu.memory_space<smem>>
    %62 = vector.broadcast %61 : f32 to vector<8x8xf32>
    %63 = arith.mulf %62, %35 : vector<8x8xf32>
    %64 = arith.addf %60, %63 : vector<8x8xf32>
    %c0_31 = arith.constant 0 : index
    %c6 = arith.constant 6 : index
    %65 = memref.load %arg1[%c0_31, %c6] : memref<8x8xf32, #tpu.memory_space<smem>>
    %66 = vector.broadcast %65 : f32 to vector<8x8xf32>
    %67 = arith.mulf %66, %38 : vector<8x8xf32>
    %68 = arith.addf %64, %67 : vector<8x8xf32>
    %c0_32 = arith.constant 0 : index
    %c7 = arith.constant 7 : index
    %69 = memref.load %arg1[%c0_32, %c7] : memref<8x8xf32, #tpu.memory_space<smem>>
    %70 = vector.broadcast %69 : f32 to vector<8x8xf32>
    %71 = arith.mulf %70, %41 : vector<8x8xf32>
    %72 = arith.addf %68, %71 : vector<8x8xf32>
    %c1_33 = arith.constant 1 : index
    %c0_34 = arith.constant 0 : index
    %73 = memref.load %arg1[%c1_33, %c0_34] : memref<8x8xf32, #tpu.memory_space<smem>>
    %74 = vector.broadcast %73 : f32 to vector<8x8xf32>
    %75 = arith.mulf %74, %20 : vector<8x8xf32>
    %c1_35 = arith.constant 1 : index
    %c1_36 = arith.constant 1 : index
    %76 = memref.load %arg1[%c1_35, %c1_36] : memref<8x8xf32, #tpu.memory_space<smem>>
    %77 = vector.broadcast %76 : f32 to vector<8x8xf32>
    %78 = arith.mulf %77, %23 : vector<8x8xf32>
    %79 = arith.addf %75, %78 : vector<8x8xf32>
    %c1_37 = arith.constant 1 : index
    %c2_38 = arith.constant 2 : index
    %80 = memref.load %arg1[%c1_37, %c2_38] : memref<8x8xf32, #tpu.memory_space<smem>>
    %81 = vector.broadcast %80 : f32 to vector<8x8xf32>
    %82 = arith.mulf %81, %26 : vector<8x8xf32>
    %83 = arith.addf %79, %82 : vector<8x8xf32>
    %c1_39 = arith.constant 1 : index
    %c3_40 = arith.constant 3 : index
    %84 = memref.load %arg1[%c1_39, %c3_40] : memref<8x8xf32, #tpu.memory_space<smem>>
    %85 = vector.broadcast %84 : f32 to vector<8x8xf32>
    %86 = arith.mulf %85, %29 : vector<8x8xf32>
    %87 = arith.addf %83, %86 : vector<8x8xf32>
    %c1_41 = arith.constant 1 : index
    %c4_42 = arith.constant 4 : index
    %88 = memref.load %arg1[%c1_41, %c4_42] : memref<8x8xf32, #tpu.memory_space<smem>>
    %89 = vector.broadcast %88 : f32 to vector<8x8xf32>
    %90 = arith.mulf %89, %32 : vector<8x8xf32>
    %91 = arith.addf %87, %90 : vector<8x8xf32>
    %c1_43 = arith.constant 1 : index
    %c5_44 = arith.constant 5 : index
    %92 = memref.load %arg1[%c1_43, %c5_44] : memref<8x8xf32, #tpu.memory_space<smem>>
    %93 = vector.broadcast %92 : f32 to vector<8x8xf32>
    %94 = arith.mulf %93, %35 : vector<8x8xf32>
    %95 = arith.addf %91, %94 : vector<8x8xf32>
    %c1_45 = arith.constant 1 : index
    %c6_46 = arith.constant 6 : index
    %96 = memref.load %arg1[%c1_45, %c6_46] : memref<8x8xf32, #tpu.memory_space<smem>>
    %97 = vector.broadcast %96 : f32 to vector<8x8xf32>
    %98 = arith.mulf %97, %38 : vector<8x8xf32>
    %99 = arith.addf %95, %98 : vector<8x8xf32>
    %c1_47 = arith.constant 1 : index
    %c7_48 = arith.constant 7 : index
    %100 = memref.load %arg1[%c1_47, %c7_48] : memref<8x8xf32, #tpu.memory_space<smem>>
    %101 = vector.broadcast %100 : f32 to vector<8x8xf32>
    %102 = arith.mulf %101, %41 : vector<8x8xf32>
    %103 = arith.addf %99, %102 : vector<8x8xf32>
    %c2_49 = arith.constant 2 : index
    %c0_50 = arith.constant 0 : index
    %104 = memref.load %arg1[%c2_49, %c0_50] : memref<8x8xf32, #tpu.memory_space<smem>>
    %105 = vector.broadcast %104 : f32 to vector<8x8xf32>
    %106 = arith.mulf %105, %20 : vector<8x8xf32>
    %c2_51 = arith.constant 2 : index
    %c1_52 = arith.constant 1 : index
    %107 = memref.load %arg1[%c2_51, %c1_52] : memref<8x8xf32, #tpu.memory_space<smem>>
    %108 = vector.broadcast %107 : f32 to vector<8x8xf32>
    %109 = arith.mulf %108, %23 : vector<8x8xf32>
    %110 = arith.addf %106, %109 : vector<8x8xf32>
    %c2_53 = arith.constant 2 : index
    %c2_54 = arith.constant 2 : index
    %111 = memref.load %arg1[%c2_53, %c2_54] : memref<8x8xf32, #tpu.memory_space<smem>>
    %112 = vector.broadcast %111 : f32 to vector<8x8xf32>
    %113 = arith.mulf %112, %26 : vector<8x8xf32>
    %114 = arith.addf %110, %113 : vector<8x8xf32>
    %c2_55 = arith.constant 2 : index
    %c3_56 = arith.constant 3 : index
    %115 = memref.load %arg1[%c2_55, %c3_56] : memref<8x8xf32, #tpu.memory_space<smem>>
    %116 = vector.broadcast %115 : f32 to vector<8x8xf32>
    %117 = arith.mulf %116, %29 : vector<8x8xf32>
    %118 = arith.addf %114, %117 : vector<8x8xf32>
    %c2_57 = arith.constant 2 : index
    %c4_58 = arith.constant 4 : index
    %119 = memref.load %arg1[%c2_57, %c4_58] : memref<8x8xf32, #tpu.memory_space<smem>>
    %120 = vector.broadcast %119 : f32 to vector<8x8xf32>
    %121 = arith.mulf %120, %32 : vector<8x8xf32>
    %122 = arith.addf %118, %121 : vector<8x8xf32>
    %c2_59 = arith.constant 2 : index
    %c5_60 = arith.constant 5 : index
    %123 = memref.load %arg1[%c2_59, %c5_60] : memref<8x8xf32, #tpu.memory_space<smem>>
    %124 = vector.broadcast %123 : f32 to vector<8x8xf32>
    %125 = arith.mulf %124, %35 : vector<8x8xf32>
    %126 = arith.addf %122, %125 : vector<8x8xf32>
    %c2_61 = arith.constant 2 : index
    %c6_62 = arith.constant 6 : index
    %127 = memref.load %arg1[%c2_61, %c6_62] : memref<8x8xf32, #tpu.memory_space<smem>>
    %128 = vector.broadcast %127 : f32 to vector<8x8xf32>
    %129 = arith.mulf %128, %38 : vector<8x8xf32>
    %130 = arith.addf %126, %129 : vector<8x8xf32>
    %c2_63 = arith.constant 2 : index
    %c7_64 = arith.constant 7 : index
    %131 = memref.load %arg1[%c2_63, %c7_64] : memref<8x8xf32, #tpu.memory_space<smem>>
    %132 = vector.broadcast %131 : f32 to vector<8x8xf32>
    %133 = arith.mulf %132, %41 : vector<8x8xf32>
    %134 = arith.addf %130, %133 : vector<8x8xf32>
    %c3_65 = arith.constant 3 : index
    %c0_66 = arith.constant 0 : index
    %135 = memref.load %arg1[%c3_65, %c0_66] : memref<8x8xf32, #tpu.memory_space<smem>>
    %136 = vector.broadcast %135 : f32 to vector<8x8xf32>
    %137 = arith.mulf %136, %20 : vector<8x8xf32>
    %c3_67 = arith.constant 3 : index
    %c1_68 = arith.constant 1 : index
    %138 = memref.load %arg1[%c3_67, %c1_68] : memref<8x8xf32, #tpu.memory_space<smem>>
    %139 = vector.broadcast %138 : f32 to vector<8x8xf32>
    %140 = arith.mulf %139, %23 : vector<8x8xf32>
    %141 = arith.addf %137, %140 : vector<8x8xf32>
    %c3_69 = arith.constant 3 : index
    %c2_70 = arith.constant 2 : index
    %142 = memref.load %arg1[%c3_69, %c2_70] : memref<8x8xf32, #tpu.memory_space<smem>>
    %143 = vector.broadcast %142 : f32 to vector<8x8xf32>
    %144 = arith.mulf %143, %26 : vector<8x8xf32>
    %145 = arith.addf %141, %144 : vector<8x8xf32>
    %c3_71 = arith.constant 3 : index
    %c3_72 = arith.constant 3 : index
    %146 = memref.load %arg1[%c3_71, %c3_72] : memref<8x8xf32, #tpu.memory_space<smem>>
    %147 = vector.broadcast %146 : f32 to vector<8x8xf32>
    %148 = arith.mulf %147, %29 : vector<8x8xf32>
    %149 = arith.addf %145, %148 : vector<8x8xf32>
    %c3_73 = arith.constant 3 : index
    %c4_74 = arith.constant 4 : index
    %150 = memref.load %arg1[%c3_73, %c4_74] : memref<8x8xf32, #tpu.memory_space<smem>>
    %151 = vector.broadcast %150 : f32 to vector<8x8xf32>
    %152 = arith.mulf %151, %32 : vector<8x8xf32>
    %153 = arith.addf %149, %152 : vector<8x8xf32>
    %c3_75 = arith.constant 3 : index
    %c5_76 = arith.constant 5 : index
    %154 = memref.load %arg1[%c3_75, %c5_76] : memref<8x8xf32, #tpu.memory_space<smem>>
    %155 = vector.broadcast %154 : f32 to vector<8x8xf32>
    %156 = arith.mulf %155, %35 : vector<8x8xf32>
    %157 = arith.addf %153, %156 : vector<8x8xf32>
    %c3_77 = arith.constant 3 : index
    %c6_78 = arith.constant 6 : index
    %158 = memref.load %arg1[%c3_77, %c6_78] : memref<8x8xf32, #tpu.memory_space<smem>>
    %159 = vector.broadcast %158 : f32 to vector<8x8xf32>
    %160 = arith.mulf %159, %38 : vector<8x8xf32>
    %161 = arith.addf %157, %160 : vector<8x8xf32>
    %c3_79 = arith.constant 3 : index
    %c7_80 = arith.constant 7 : index
    %162 = memref.load %arg1[%c3_79, %c7_80] : memref<8x8xf32, #tpu.memory_space<smem>>
    %163 = vector.broadcast %162 : f32 to vector<8x8xf32>
    %164 = arith.mulf %163, %41 : vector<8x8xf32>
    %165 = arith.addf %161, %164 : vector<8x8xf32>
    %c4_81 = arith.constant 4 : index
    %c0_82 = arith.constant 0 : index
    %166 = memref.load %arg1[%c4_81, %c0_82] : memref<8x8xf32, #tpu.memory_space<smem>>
    %167 = vector.broadcast %166 : f32 to vector<8x8xf32>
    %168 = arith.mulf %167, %20 : vector<8x8xf32>
    %c4_83 = arith.constant 4 : index
    %c1_84 = arith.constant 1 : index
    %169 = memref.load %arg1[%c4_83, %c1_84] : memref<8x8xf32, #tpu.memory_space<smem>>
    %170 = vector.broadcast %169 : f32 to vector<8x8xf32>
    %171 = arith.mulf %170, %23 : vector<8x8xf32>
    %172 = arith.addf %168, %171 : vector<8x8xf32>
    %c4_85 = arith.constant 4 : index
    %c2_86 = arith.constant 2 : index
    %173 = memref.load %arg1[%c4_85, %c2_86] : memref<8x8xf32, #tpu.memory_space<smem>>
    %174 = vector.broadcast %173 : f32 to vector<8x8xf32>
    %175 = arith.mulf %174, %26 : vector<8x8xf32>
    %176 = arith.addf %172, %175 : vector<8x8xf32>
    %c4_87 = arith.constant 4 : index
    %c3_88 = arith.constant 3 : index
    %177 = memref.load %arg1[%c4_87, %c3_88] : memref<8x8xf32, #tpu.memory_space<smem>>
    %178 = vector.broadcast %177 : f32 to vector<8x8xf32>
    %179 = arith.mulf %178, %29 : vector<8x8xf32>
    %180 = arith.addf %176, %179 : vector<8x8xf32>
    %c4_89 = arith.constant 4 : index
    %c4_90 = arith.constant 4 : index
    %181 = memref.load %arg1[%c4_89, %c4_90] : memref<8x8xf32, #tpu.memory_space<smem>>
    %182 = vector.broadcast %181 : f32 to vector<8x8xf32>
    %183 = arith.mulf %182, %32 : vector<8x8xf32>
    %184 = arith.addf %180, %183 : vector<8x8xf32>
    %c4_91 = arith.constant 4 : index
    %c5_92 = arith.constant 5 : index
    %185 = memref.load %arg1[%c4_91, %c5_92] : memref<8x8xf32, #tpu.memory_space<smem>>
    %186 = vector.broadcast %185 : f32 to vector<8x8xf32>
    %187 = arith.mulf %186, %35 : vector<8x8xf32>
    %188 = arith.addf %184, %187 : vector<8x8xf32>
    %c4_93 = arith.constant 4 : index
    %c6_94 = arith.constant 6 : index
    %189 = memref.load %arg1[%c4_93, %c6_94] : memref<8x8xf32, #tpu.memory_space<smem>>
    %190 = vector.broadcast %189 : f32 to vector<8x8xf32>
    %191 = arith.mulf %190, %38 : vector<8x8xf32>
    %192 = arith.addf %188, %191 : vector<8x8xf32>
    %c4_95 = arith.constant 4 : index
    %c7_96 = arith.constant 7 : index
    %193 = memref.load %arg1[%c4_95, %c7_96] : memref<8x8xf32, #tpu.memory_space<smem>>
    %194 = vector.broadcast %193 : f32 to vector<8x8xf32>
    %195 = arith.mulf %194, %41 : vector<8x8xf32>
    %196 = arith.addf %192, %195 : vector<8x8xf32>
    %c5_97 = arith.constant 5 : index
    %c0_98 = arith.constant 0 : index
    %197 = memref.load %arg1[%c5_97, %c0_98] : memref<8x8xf32, #tpu.memory_space<smem>>
    %198 = vector.broadcast %197 : f32 to vector<8x8xf32>
    %199 = arith.mulf %198, %20 : vector<8x8xf32>
    %c5_99 = arith.constant 5 : index
    %c1_100 = arith.constant 1 : index
    %200 = memref.load %arg1[%c5_99, %c1_100] : memref<8x8xf32, #tpu.memory_space<smem>>
    %201 = vector.broadcast %200 : f32 to vector<8x8xf32>
    %202 = arith.mulf %201, %23 : vector<8x8xf32>
    %203 = arith.addf %199, %202 : vector<8x8xf32>
    %c5_101 = arith.constant 5 : index
    %c2_102 = arith.constant 2 : index
    %204 = memref.load %arg1[%c5_101, %c2_102] : memref<8x8xf32, #tpu.memory_space<smem>>
    %205 = vector.broadcast %204 : f32 to vector<8x8xf32>
    %206 = arith.mulf %205, %26 : vector<8x8xf32>
    %207 = arith.addf %203, %206 : vector<8x8xf32>
    %c5_103 = arith.constant 5 : index
    %c3_104 = arith.constant 3 : index
    %208 = memref.load %arg1[%c5_103, %c3_104] : memref<8x8xf32, #tpu.memory_space<smem>>
    %209 = vector.broadcast %208 : f32 to vector<8x8xf32>
    %210 = arith.mulf %209, %29 : vector<8x8xf32>
    %211 = arith.addf %207, %210 : vector<8x8xf32>
    %c5_105 = arith.constant 5 : index
    %c4_106 = arith.constant 4 : index
    %212 = memref.load %arg1[%c5_105, %c4_106] : memref<8x8xf32, #tpu.memory_space<smem>>
    %213 = vector.broadcast %212 : f32 to vector<8x8xf32>
    %214 = arith.mulf %213, %32 : vector<8x8xf32>
    %215 = arith.addf %211, %214 : vector<8x8xf32>
    %c5_107 = arith.constant 5 : index
    %c5_108 = arith.constant 5 : index
    %216 = memref.load %arg1[%c5_107, %c5_108] : memref<8x8xf32, #tpu.memory_space<smem>>
    %217 = vector.broadcast %216 : f32 to vector<8x8xf32>
    %218 = arith.mulf %217, %35 : vector<8x8xf32>
    %219 = arith.addf %215, %218 : vector<8x8xf32>
    %c5_109 = arith.constant 5 : index
    %c6_110 = arith.constant 6 : index
    %220 = memref.load %arg1[%c5_109, %c6_110] : memref<8x8xf32, #tpu.memory_space<smem>>
    %221 = vector.broadcast %220 : f32 to vector<8x8xf32>
    %222 = arith.mulf %221, %38 : vector<8x8xf32>
    %223 = arith.addf %219, %222 : vector<8x8xf32>
    %c5_111 = arith.constant 5 : index
    %c7_112 = arith.constant 7 : index
    %224 = memref.load %arg1[%c5_111, %c7_112] : memref<8x8xf32, #tpu.memory_space<smem>>
    %225 = vector.broadcast %224 : f32 to vector<8x8xf32>
    %226 = arith.mulf %225, %41 : vector<8x8xf32>
    %227 = arith.addf %223, %226 : vector<8x8xf32>
    %c6_113 = arith.constant 6 : index
    %c0_114 = arith.constant 0 : index
    %228 = memref.load %arg1[%c6_113, %c0_114] : memref<8x8xf32, #tpu.memory_space<smem>>
    %229 = vector.broadcast %228 : f32 to vector<8x8xf32>
    %230 = arith.mulf %229, %20 : vector<8x8xf32>
    %c6_115 = arith.constant 6 : index
    %c1_116 = arith.constant 1 : index
    %231 = memref.load %arg1[%c6_115, %c1_116] : memref<8x8xf32, #tpu.memory_space<smem>>
    %232 = vector.broadcast %231 : f32 to vector<8x8xf32>
    %233 = arith.mulf %232, %23 : vector<8x8xf32>
    %234 = arith.addf %230, %233 : vector<8x8xf32>
    %c6_117 = arith.constant 6 : index
    %c2_118 = arith.constant 2 : index
    %235 = memref.load %arg1[%c6_117, %c2_118] : memref<8x8xf32, #tpu.memory_space<smem>>
    %236 = vector.broadcast %235 : f32 to vector<8x8xf32>
    %237 = arith.mulf %236, %26 : vector<8x8xf32>
    %238 = arith.addf %234, %237 : vector<8x8xf32>
    %c6_119 = arith.constant 6 : index
    %c3_120 = arith.constant 3 : index
    %239 = memref.load %arg1[%c6_119, %c3_120] : memref<8x8xf32, #tpu.memory_space<smem>>
    %240 = vector.broadcast %239 : f32 to vector<8x8xf32>
    %241 = arith.mulf %240, %29 : vector<8x8xf32>
    %242 = arith.addf %238, %241 : vector<8x8xf32>
    %c6_121 = arith.constant 6 : index
    %c4_122 = arith.constant 4 : index
    %243 = memref.load %arg1[%c6_121, %c4_122] : memref<8x8xf32, #tpu.memory_space<smem>>
    %244 = vector.broadcast %243 : f32 to vector<8x8xf32>
    %245 = arith.mulf %244, %32 : vector<8x8xf32>
    %246 = arith.addf %242, %245 : vector<8x8xf32>
    %c6_123 = arith.constant 6 : index
    %c5_124 = arith.constant 5 : index
    %247 = memref.load %arg1[%c6_123, %c5_124] : memref<8x8xf32, #tpu.memory_space<smem>>
    %248 = vector.broadcast %247 : f32 to vector<8x8xf32>
    %249 = arith.mulf %248, %35 : vector<8x8xf32>
    %250 = arith.addf %246, %249 : vector<8x8xf32>
    %c6_125 = arith.constant 6 : index
    %c6_126 = arith.constant 6 : index
    %251 = memref.load %arg1[%c6_125, %c6_126] : memref<8x8xf32, #tpu.memory_space<smem>>
    %252 = vector.broadcast %251 : f32 to vector<8x8xf32>
    %253 = arith.mulf %252, %38 : vector<8x8xf32>
    %254 = arith.addf %250, %253 : vector<8x8xf32>
    %c6_127 = arith.constant 6 : index
    %c7_128 = arith.constant 7 : index
    %255 = memref.load %arg1[%c6_127, %c7_128] : memref<8x8xf32, #tpu.memory_space<smem>>
    %256 = vector.broadcast %255 : f32 to vector<8x8xf32>
    %257 = arith.mulf %256, %41 : vector<8x8xf32>
    %258 = arith.addf %254, %257 : vector<8x8xf32>
    %c7_129 = arith.constant 7 : index
    %c0_130 = arith.constant 0 : index
    %259 = memref.load %arg1[%c7_129, %c0_130] : memref<8x8xf32, #tpu.memory_space<smem>>
    %260 = vector.broadcast %259 : f32 to vector<8x8xf32>
    %261 = arith.mulf %260, %20 : vector<8x8xf32>
    %c7_131 = arith.constant 7 : index
    %c1_132 = arith.constant 1 : index
    %262 = memref.load %arg1[%c7_131, %c1_132] : memref<8x8xf32, #tpu.memory_space<smem>>
    %263 = vector.broadcast %262 : f32 to vector<8x8xf32>
    %264 = arith.mulf %263, %23 : vector<8x8xf32>
    %265 = arith.addf %261, %264 : vector<8x8xf32>
    %c7_133 = arith.constant 7 : index
    %c2_134 = arith.constant 2 : index
    %266 = memref.load %arg1[%c7_133, %c2_134] : memref<8x8xf32, #tpu.memory_space<smem>>
    %267 = vector.broadcast %266 : f32 to vector<8x8xf32>
    %268 = arith.mulf %267, %26 : vector<8x8xf32>
    %269 = arith.addf %265, %268 : vector<8x8xf32>
    %c7_135 = arith.constant 7 : index
    %c3_136 = arith.constant 3 : index
    %270 = memref.load %arg1[%c7_135, %c3_136] : memref<8x8xf32, #tpu.memory_space<smem>>
    %271 = vector.broadcast %270 : f32 to vector<8x8xf32>
    %272 = arith.mulf %271, %29 : vector<8x8xf32>
    %273 = arith.addf %269, %272 : vector<8x8xf32>
    %c7_137 = arith.constant 7 : index
    %c4_138 = arith.constant 4 : index
    %274 = memref.load %arg1[%c7_137, %c4_138] : memref<8x8xf32, #tpu.memory_space<smem>>
    %275 = vector.broadcast %274 : f32 to vector<8x8xf32>
    %276 = arith.mulf %275, %32 : vector<8x8xf32>
    %277 = arith.addf %273, %276 : vector<8x8xf32>
    %c7_139 = arith.constant 7 : index
    %c5_140 = arith.constant 5 : index
    %278 = memref.load %arg1[%c7_139, %c5_140] : memref<8x8xf32, #tpu.memory_space<smem>>
    %279 = vector.broadcast %278 : f32 to vector<8x8xf32>
    %280 = arith.mulf %279, %35 : vector<8x8xf32>
    %281 = arith.addf %277, %280 : vector<8x8xf32>
    %c7_141 = arith.constant 7 : index
    %c6_142 = arith.constant 6 : index
    %282 = memref.load %arg1[%c7_141, %c6_142] : memref<8x8xf32, #tpu.memory_space<smem>>
    %283 = vector.broadcast %282 : f32 to vector<8x8xf32>
    %284 = arith.mulf %283, %38 : vector<8x8xf32>
    %285 = arith.addf %281, %284 : vector<8x8xf32>
    %c7_143 = arith.constant 7 : index
    %c7_144 = arith.constant 7 : index
    %286 = memref.load %arg1[%c7_143, %c7_144] : memref<8x8xf32, #tpu.memory_space<smem>>
    %287 = vector.broadcast %286 : f32 to vector<8x8xf32>
    %288 = arith.mulf %287, %41 : vector<8x8xf32>
    %289 = arith.addf %285, %288 : vector<8x8xf32>
    %290 = arith.addf %72, %103 : vector<8x8xf32>
    %291 = arith.addf %290, %134 : vector<8x8xf32>
    %292 = arith.addf %291, %165 : vector<8x8xf32>
    %293 = arith.addf %292, %196 : vector<8x8xf32>
    %294 = arith.addf %293, %227 : vector<8x8xf32>
    %295 = arith.addf %294, %258 : vector<8x8xf32>
    %296 = arith.addf %295, %289 : vector<8x8xf32>
    %c0_145 = arith.constant 0 : index
    %c0_146 = arith.constant 0 : index
    %297 = vector.load %arg9[%c0_145, %c0_146] : memref<8x8xf32, #tpu.memory_space<vmem>>, vector<8x8xf32>
    %cst_147 = arith.constant 0.000000e+00 : f32
    %298 = vector.broadcast %cst_147 : f32 to vector<8x24xf32>
    %299 = vector.extract_strided_slice %297 {offsets = [0, 0], sizes = [1, 8], strides = [1, 1]} : vector<8x8xf32> to vector<1x8xf32>
    %300 = vector.broadcast %299 : vector<1x8xf32> to vector<8x8xf32>
    %301 = arith.mulf %300, %296 : vector<8x8xf32>
    %302 = arith.addf %72, %301 : vector<8x8xf32>
    %303 = math.tanh %302 : vector<8x8xf32>
    %304 = math.exp %303 : vector<8x8xf32>
    %cst_148 = arith.constant dense<0.000000e+00> : vector<8xf32>
    %305 = vector.multi_reduction <add>, %304, %cst_148 [1] : vector<8x8xf32> to vector<8xf32>
    %306 = vector.shape_cast %305 : vector<8xf32> to vector<8x1xf32>
    %307 = tpu.reciprocal %306 {approx = true} : vector<8x1xf32> -> vector<8x1xf32>
    %308 = vector.broadcast %307 : vector<8x1xf32> to vector<8x8xf32>
    %309 = arith.mulf %304, %308 : vector<8x8xf32>
    %310 = vector.extract_strided_slice %17 {offsets = [0, 0], sizes = [8, 3], strides = [1, 1]} : vector<8x24xf32> to vector<8x3xf32>
    %311 = arith.truncf %310 : vector<8x3xf32> to vector<8x3xbf16>
    %312 = arith.truncf %309 : vector<8x8xf32> to vector<8x8xbf16>
    %cst_149 = arith.constant dense<0.000000e+00> : vector<8x3xf32>
    %313 = tpu.matmul %312, %311, %cst_149 {dimension_numbers = #tpu.dot_dimension_numbers<[1], [0], [0], [1], [0, 0, 1, 1], [], []>} : vector<8x8xbf16>, vector<8x3xbf16>, vector<8x3xf32> -> vector<8x3xf32>
    %314 = arith.truncf %313 : vector<8x3xf32> to vector<8x3xbf16>
    %c0_150 = arith.constant 0 : index
    %c0_151 = arith.constant 0 : index
    %c0_152 = arith.constant 0 : index
    %315 = vector.load %arg10[%c0_150, %c0_151, %c0_152] : memref<8x3x24xbf16, #tpu.memory_space<vmem>>, vector<1x3x24xbf16>
    %316 = vector.shape_cast %315 : vector<1x3x24xbf16> to vector<3x24xbf16>
    %cst_153 = arith.constant dense<0.000000e+00> : vector<8x24xf32>
    %317 = tpu.matmul %314, %316, %cst_153 {dimension_numbers = #tpu.dot_dimension_numbers<[1], [0], [0], [1], [0, 0, 1, 1], [], []>} : vector<8x3xbf16>, vector<3x24xbf16>, vector<8x24xf32> -> vector<8x24xf32>
    %318 = arith.addf %298, %317 : vector<8x24xf32>
    %319 = vector.extract_strided_slice %297 {offsets = [1, 0], sizes = [1, 8], strides = [1, 1]} : vector<8x8xf32> to vector<1x8xf32>
    %320 = vector.broadcast %319 : vector<1x8xf32> to vector<8x8xf32>
    %321 = arith.mulf %320, %296 : vector<8x8xf32>
    %322 = arith.addf %103, %321 : vector<8x8xf32>
    %323 = math.tanh %322 : vector<8x8xf32>
    %324 = math.exp %323 : vector<8x8xf32>
    %cst_154 = arith.constant dense<0.000000e+00> : vector<8xf32>
    %325 = vector.multi_reduction <add>, %324, %cst_154 [1] : vector<8x8xf32> to vector<8xf32>
    %326 = vector.shape_cast %325 : vector<8xf32> to vector<8x1xf32>
    %327 = tpu.reciprocal %326 {approx = true} : vector<8x1xf32> -> vector<8x1xf32>
    %328 = vector.broadcast %327 : vector<8x1xf32> to vector<8x8xf32>
    %329 = arith.mulf %324, %328 : vector<8x8xf32>
    %330 = vector.extract_strided_slice %17 {offsets = [0, 3], sizes = [8, 3], strides = [1, 1]} : vector<8x24xf32> to vector<8x3xf32>
    %331 = arith.truncf %330 : vector<8x3xf32> to vector<8x3xbf16>
    %332 = arith.truncf %329 : vector<8x8xf32> to vector<8x8xbf16>
    %cst_155 = arith.constant dense<0.000000e+00> : vector<8x3xf32>
    %333 = tpu.matmul %332, %331, %cst_155 {dimension_numbers = #tpu.dot_dimension_numbers<[1], [0], [0], [1], [0, 0, 1, 1], [], []>} : vector<8x8xbf16>, vector<8x3xbf16>, vector<8x3xf32> -> vector<8x3xf32>
    %334 = arith.truncf %333 : vector<8x3xf32> to vector<8x3xbf16>
    %c1_156 = arith.constant 1 : index
    %c0_157 = arith.constant 0 : index
    %c0_158 = arith.constant 0 : index
    %335 = vector.load %arg10[%c1_156, %c0_157, %c0_158] : memref<8x3x24xbf16, #tpu.memory_space<vmem>>, vector<1x3x24xbf16>
    %336 = vector.shape_cast %335 : vector<1x3x24xbf16> to vector<3x24xbf16>
    %cst_159 = arith.constant dense<0.000000e+00> : vector<8x24xf32>
    %337 = tpu.matmul %334, %336, %cst_159 {dimension_numbers = #tpu.dot_dimension_numbers<[1], [0], [0], [1], [0, 0, 1, 1], [], []>} : vector<8x3xbf16>, vector<3x24xbf16>, vector<8x24xf32> -> vector<8x24xf32>
    %338 = arith.addf %318, %337 : vector<8x24xf32>
    %339 = vector.extract_strided_slice %297 {offsets = [2, 0], sizes = [1, 8], strides = [1, 1]} : vector<8x8xf32> to vector<1x8xf32>
    %340 = vector.broadcast %339 : vector<1x8xf32> to vector<8x8xf32>
    %341 = arith.mulf %340, %296 : vector<8x8xf32>
    %342 = arith.addf %134, %341 : vector<8x8xf32>
    %343 = math.tanh %342 : vector<8x8xf32>
    %344 = math.exp %343 : vector<8x8xf32>
    %cst_160 = arith.constant dense<0.000000e+00> : vector<8xf32>
    %345 = vector.multi_reduction <add>, %344, %cst_160 [1] : vector<8x8xf32> to vector<8xf32>
    %346 = vector.shape_cast %345 : vector<8xf32> to vector<8x1xf32>
    %347 = tpu.reciprocal %346 {approx = true} : vector<8x1xf32> -> vector<8x1xf32>
    %348 = vector.broadcast %347 : vector<8x1xf32> to vector<8x8xf32>
    %349 = arith.mulf %344, %348 : vector<8x8xf32>
    %350 = vector.extract_strided_slice %17 {offsets = [0, 6], sizes = [8, 3], strides = [1, 1]} : vector<8x24xf32> to vector<8x3xf32>
    %351 = arith.truncf %350 : vector<8x3xf32> to vector<8x3xbf16>
    %352 = arith.truncf %349 : vector<8x8xf32> to vector<8x8xbf16>
    %cst_161 = arith.constant dense<0.000000e+00> : vector<8x3xf32>
    %353 = tpu.matmul %352, %351, %cst_161 {dimension_numbers = #tpu.dot_dimension_numbers<[1], [0], [0], [1], [0, 0, 1, 1], [], []>} : vector<8x8xbf16>, vector<8x3xbf16>, vector<8x3xf32> -> vector<8x3xf32>
    %354 = arith.truncf %353 : vector<8x3xf32> to vector<8x3xbf16>
    %c2_162 = arith.constant 2 : index
    %c0_163 = arith.constant 0 : index
    %c0_164 = arith.constant 0 : index
    %355 = vector.load %arg10[%c2_162, %c0_163, %c0_164] : memref<8x3x24xbf16, #tpu.memory_space<vmem>>, vector<1x3x24xbf16>
    %356 = vector.shape_cast %355 : vector<1x3x24xbf16> to vector<3x24xbf16>
    %cst_165 = arith.constant dense<0.000000e+00> : vector<8x24xf32>
    %357 = tpu.matmul %354, %356, %cst_165 {dimension_numbers = #tpu.dot_dimension_numbers<[1], [0], [0], [1], [0, 0, 1, 1], [], []>} : vector<8x3xbf16>, vector<3x24xbf16>, vector<8x24xf32> -> vector<8x24xf32>
    %358 = arith.addf %338, %357 : vector<8x24xf32>
    %359 = vector.extract_strided_slice %297 {offsets = [3, 0], sizes = [1, 8], strides = [1, 1]} : vector<8x8xf32> to vector<1x8xf32>
    %360 = vector.broadcast %359 : vector<1x8xf32> to vector<8x8xf32>
    %361 = arith.mulf %360, %296 : vector<8x8xf32>
    %362 = arith.addf %165, %361 : vector<8x8xf32>
    %363 = math.tanh %362 : vector<8x8xf32>
    %364 = math.exp %363 : vector<8x8xf32>
    %cst_166 = arith.constant dense<0.000000e+00> : vector<8xf32>
    %365 = vector.multi_reduction <add>, %364, %cst_166 [1] : vector<8x8xf32> to vector<8xf32>
    %366 = vector.shape_cast %365 : vector<8xf32> to vector<8x1xf32>
    %367 = tpu.reciprocal %366 {approx = true} : vector<8x1xf32> -> vector<8x1xf32>
    %368 = vector.broadcast %367 : vector<8x1xf32> to vector<8x8xf32>
    %369 = arith.mulf %364, %368 : vector<8x8xf32>
    %370 = vector.extract_strided_slice %17 {offsets = [0, 9], sizes = [8, 3], strides = [1, 1]} : vector<8x24xf32> to vector<8x3xf32>
    %371 = arith.truncf %370 : vector<8x3xf32> to vector<8x3xbf16>
    %372 = arith.truncf %369 : vector<8x8xf32> to vector<8x8xbf16>
    %cst_167 = arith.constant dense<0.000000e+00> : vector<8x3xf32>
    %373 = tpu.matmul %372, %371, %cst_167 {dimension_numbers = #tpu.dot_dimension_numbers<[1], [0], [0], [1], [0, 0, 1, 1], [], []>} : vector<8x8xbf16>, vector<8x3xbf16>, vector<8x3xf32> -> vector<8x3xf32>
    %374 = arith.truncf %373 : vector<8x3xf32> to vector<8x3xbf16>
    %c3_168 = arith.constant 3 : index
    %c0_169 = arith.constant 0 : index
    %c0_170 = arith.constant 0 : index
    %375 = vector.load %arg10[%c3_168, %c0_169, %c0_170] : memref<8x3x24xbf16, #tpu.memory_space<vmem>>, vector<1x3x24xbf16>
    %376 = vector.shape_cast %375 : vector<1x3x24xbf16> to vector<3x24xbf16>
    %cst_171 = arith.constant dense<0.000000e+00> : vector<8x24xf32>
    %377 = tpu.matmul %374, %376, %cst_171 {dimension_numbers = #tpu.dot_dimension_numbers<[1], [0], [0], [1], [0, 0, 1, 1], [], []>} : vector<8x3xbf16>, vector<3x24xbf16>, vector<8x24xf32> -> vector<8x24xf32>
    %378 = arith.addf %358, %377 : vector<8x24xf32>
    %379 = vector.extract_strided_slice %297 {offsets = [4, 0], sizes = [1, 8], strides = [1, 1]} : vector<8x8xf32> to vector<1x8xf32>
    %380 = vector.broadcast %379 : vector<1x8xf32> to vector<8x8xf32>
    %381 = arith.mulf %380, %296 : vector<8x8xf32>
    %382 = arith.addf %196, %381 : vector<8x8xf32>
    %383 = math.tanh %382 : vector<8x8xf32>
    %384 = math.exp %383 : vector<8x8xf32>
    %cst_172 = arith.constant dense<0.000000e+00> : vector<8xf32>
    %385 = vector.multi_reduction <add>, %384, %cst_172 [1] : vector<8x8xf32> to vector<8xf32>
    %386 = vector.shape_cast %385 : vector<8xf32> to vector<8x1xf32>
    %387 = tpu.reciprocal %386 {approx = true} : vector<8x1xf32> -> vector<8x1xf32>
    %388 = vector.broadcast %387 : vector<8x1xf32> to vector<8x8xf32>
    %389 = arith.mulf %384, %388 : vector<8x8xf32>
    %390 = vector.extract_strided_slice %17 {offsets = [0, 12], sizes = [8, 3], strides = [1, 1]} : vector<8x24xf32> to vector<8x3xf32>
    %391 = arith.truncf %390 : vector<8x3xf32> to vector<8x3xbf16>
    %392 = arith.truncf %389 : vector<8x8xf32> to vector<8x8xbf16>
    %cst_173 = arith.constant dense<0.000000e+00> : vector<8x3xf32>
    %393 = tpu.matmul %392, %391, %cst_173 {dimension_numbers = #tpu.dot_dimension_numbers<[1], [0], [0], [1], [0, 0, 1, 1], [], []>} : vector<8x8xbf16>, vector<8x3xbf16>, vector<8x3xf32> -> vector<8x3xf32>
    %394 = arith.truncf %393 : vector<8x3xf32> to vector<8x3xbf16>
    %c4_174 = arith.constant 4 : index
    %c0_175 = arith.constant 0 : index
    %c0_176 = arith.constant 0 : index
    %395 = vector.load %arg10[%c4_174, %c0_175, %c0_176] : memref<8x3x24xbf16, #tpu.memory_space<vmem>>, vector<1x3x24xbf16>
    %396 = vector.shape_cast %395 : vector<1x3x24xbf16> to vector<3x24xbf16>
    %cst_177 = arith.constant dense<0.000000e+00> : vector<8x24xf32>
    %397 = tpu.matmul %394, %396, %cst_177 {dimension_numbers = #tpu.dot_dimension_numbers<[1], [0], [0], [1], [0, 0, 1, 1], [], []>} : vector<8x3xbf16>, vector<3x24xbf16>, vector<8x24xf32> -> vector<8x24xf32>
    %398 = arith.addf %378, %397 : vector<8x24xf32>
    %399 = vector.extract_strided_slice %297 {offsets = [5, 0], sizes = [1, 8], strides = [1, 1]} : vector<8x8xf32> to vector<1x8xf32>
    %400 = vector.broadcast %399 : vector<1x8xf32> to vector<8x8xf32>
    %401 = arith.mulf %400, %296 : vector<8x8xf32>
    %402 = arith.addf %227, %401 : vector<8x8xf32>
    %403 = math.tanh %402 : vector<8x8xf32>
    %404 = math.exp %403 : vector<8x8xf32>
    %cst_178 = arith.constant dense<0.000000e+00> : vector<8xf32>
    %405 = vector.multi_reduction <add>, %404, %cst_178 [1] : vector<8x8xf32> to vector<8xf32>
    %406 = vector.shape_cast %405 : vector<8xf32> to vector<8x1xf32>
    %407 = tpu.reciprocal %406 {approx = true} : vector<8x1xf32> -> vector<8x1xf32>
    %408 = vector.broadcast %407 : vector<8x1xf32> to vector<8x8xf32>
    %409 = arith.mulf %404, %408 : vector<8x8xf32>
    %410 = vector.extract_strided_slice %17 {offsets = [0, 15], sizes = [8, 3], strides = [1, 1]} : vector<8x24xf32> to vector<8x3xf32>
    %411 = arith.truncf %410 : vector<8x3xf32> to vector<8x3xbf16>
    %412 = arith.truncf %409 : vector<8x8xf32> to vector<8x8xbf16>
    %cst_179 = arith.constant dense<0.000000e+00> : vector<8x3xf32>
    %413 = tpu.matmul %412, %411, %cst_179 {dimension_numbers = #tpu.dot_dimension_numbers<[1], [0], [0], [1], [0, 0, 1, 1], [], []>} : vector<8x8xbf16>, vector<8x3xbf16>, vector<8x3xf32> -> vector<8x3xf32>
    %414 = arith.truncf %413 : vector<8x3xf32> to vector<8x3xbf16>
    %c5_180 = arith.constant 5 : index
    %c0_181 = arith.constant 0 : index
    %c0_182 = arith.constant 0 : index
    %415 = vector.load %arg10[%c5_180, %c0_181, %c0_182] : memref<8x3x24xbf16, #tpu.memory_space<vmem>>, vector<1x3x24xbf16>
    %416 = vector.shape_cast %415 : vector<1x3x24xbf16> to vector<3x24xbf16>
    %cst_183 = arith.constant dense<0.000000e+00> : vector<8x24xf32>
    %417 = tpu.matmul %414, %416, %cst_183 {dimension_numbers = #tpu.dot_dimension_numbers<[1], [0], [0], [1], [0, 0, 1, 1], [], []>} : vector<8x3xbf16>, vector<3x24xbf16>, vector<8x24xf32> -> vector<8x24xf32>
    %418 = arith.addf %398, %417 : vector<8x24xf32>
    %419 = vector.extract_strided_slice %297 {offsets = [6, 0], sizes = [1, 8], strides = [1, 1]} : vector<8x8xf32> to vector<1x8xf32>
    %420 = vector.broadcast %419 : vector<1x8xf32> to vector<8x8xf32>
    %421 = arith.mulf %420, %296 : vector<8x8xf32>
    %422 = arith.addf %258, %421 : vector<8x8xf32>
    %423 = math.tanh %422 : vector<8x8xf32>
    %424 = math.exp %423 : vector<8x8xf32>
    %cst_184 = arith.constant dense<0.000000e+00> : vector<8xf32>
    %425 = vector.multi_reduction <add>, %424, %cst_184 [1] : vector<8x8xf32> to vector<8xf32>
    %426 = vector.shape_cast %425 : vector<8xf32> to vector<8x1xf32>
    %427 = tpu.reciprocal %426 {approx = true} : vector<8x1xf32> -> vector<8x1xf32>
    %428 = vector.broadcast %427 : vector<8x1xf32> to vector<8x8xf32>
    %429 = arith.mulf %424, %428 : vector<8x8xf32>
    %430 = vector.extract_strided_slice %17 {offsets = [0, 18], sizes = [8, 3], strides = [1, 1]} : vector<8x24xf32> to vector<8x3xf32>
    %431 = arith.truncf %430 : vector<8x3xf32> to vector<8x3xbf16>
    %432 = arith.truncf %429 : vector<8x8xf32> to vector<8x8xbf16>
    %cst_185 = arith.constant dense<0.000000e+00> : vector<8x3xf32>
    %433 = tpu.matmul %432, %431, %cst_185 {dimension_numbers = #tpu.dot_dimension_numbers<[1], [0], [0], [1], [0, 0, 1, 1], [], []>} : vector<8x8xbf16>, vector<8x3xbf16>, vector<8x3xf32> -> vector<8x3xf32>
    %434 = arith.truncf %433 : vector<8x3xf32> to vector<8x3xbf16>
    %c6_186 = arith.constant 6 : index
    %c0_187 = arith.constant 0 : index
    %c0_188 = arith.constant 0 : index
    %435 = vector.load %arg10[%c6_186, %c0_187, %c0_188] : memref<8x3x24xbf16, #tpu.memory_space<vmem>>, vector<1x3x24xbf16>
    %436 = vector.shape_cast %435 : vector<1x3x24xbf16> to vector<3x24xbf16>
    %cst_189 = arith.constant dense<0.000000e+00> : vector<8x24xf32>
    %437 = tpu.matmul %434, %436, %cst_189 {dimension_numbers = #tpu.dot_dimension_numbers<[1], [0], [0], [1], [0, 0, 1, 1], [], []>} : vector<8x3xbf16>, vector<3x24xbf16>, vector<8x24xf32> -> vector<8x24xf32>
    %438 = arith.addf %418, %437 : vector<8x24xf32>
    %439 = vector.extract_strided_slice %297 {offsets = [7, 0], sizes = [1, 8], strides = [1, 1]} : vector<8x8xf32> to vector<1x8xf32>
    %440 = vector.broadcast %439 : vector<1x8xf32> to vector<8x8xf32>
    %441 = arith.mulf %440, %296 : vector<8x8xf32>
    %442 = arith.addf %289, %441 : vector<8x8xf32>
    %443 = math.tanh %442 : vector<8x8xf32>
    %444 = math.exp %443 : vector<8x8xf32>
    %cst_190 = arith.constant dense<0.000000e+00> : vector<8xf32>
    %445 = vector.multi_reduction <add>, %444, %cst_190 [1] : vector<8x8xf32> to vector<8xf32>
    %446 = vector.shape_cast %445 : vector<8xf32> to vector<8x1xf32>
    %447 = tpu.reciprocal %446 {approx = true} : vector<8x1xf32> -> vector<8x1xf32>
    %448 = vector.broadcast %447 : vector<8x1xf32> to vector<8x8xf32>
    %449 = arith.mulf %444, %448 : vector<8x8xf32>
    %450 = vector.extract_strided_slice %17 {offsets = [0, 21], sizes = [8, 3], strides = [1, 1]} : vector<8x24xf32> to vector<8x3xf32>
    %451 = arith.truncf %450 : vector<8x3xf32> to vector<8x3xbf16>
    %452 = arith.truncf %449 : vector<8x8xf32> to vector<8x8xbf16>
    %cst_191 = arith.constant dense<0.000000e+00> : vector<8x3xf32>
    %453 = tpu.matmul %452, %451, %cst_191 {dimension_numbers = #tpu.dot_dimension_numbers<[1], [0], [0], [1], [0, 0, 1, 1], [], []>} : vector<8x8xbf16>, vector<8x3xbf16>, vector<8x3xf32> -> vector<8x3xf32>
    %454 = arith.truncf %453 : vector<8x3xf32> to vector<8x3xbf16>
    %c7_192 = arith.constant 7 : index
    %c0_193 = arith.constant 0 : index
    %c0_194 = arith.constant 0 : index
    %455 = vector.load %arg10[%c7_192, %c0_193, %c0_194] : memref<8x3x24xbf16, #tpu.memory_space<vmem>>, vector<1x3x24xbf16>
    %456 = vector.shape_cast %455 : vector<1x3x24xbf16> to vector<3x24xbf16>
    %cst_195 = arith.constant dense<0.000000e+00> : vector<8x24xf32>
    %457 = tpu.matmul %454, %456, %cst_195 {dimension_numbers = #tpu.dot_dimension_numbers<[1], [0], [0], [1], [0, 0, 1, 1], [], []>} : vector<8x3xbf16>, vector<3x24xbf16>, vector<8x24xf32> -> vector<8x24xf32>
    %458 = arith.addf %438, %457 : vector<8x24xf32>
    %c0_196 = arith.constant 0 : index
    %c0_197 = arith.constant 0 : index
    %459 = vector.load %arg11[%c0_196, %c0_197] : memref<1x24xf32, #tpu.memory_space<vmem>>, vector<1x24xf32>
    %460 = vector.broadcast %459 : vector<1x24xf32> to vector<8x24xf32>
    %461 = arith.addf %458, %460 : vector<8x24xf32>
    %c0_198 = arith.constant 0 : index
    %c0_199 = arith.constant 0 : index
    %c0_200 = arith.constant 0 : index
    %462 = vector.load %arg12[%c0_198, %c0_199, %c0_200] : memref<1x8x24xf32, #tpu.memory_space<vmem>>, vector<1x8x24xf32>
    %463 = vector.shape_cast %462 : vector<1x8x24xf32> to vector<8x24xf32>
    %464 = vector.shape_cast %461 : vector<8x24xf32> to vector<1x8x24xf32>
    tpu.vector_store %arg12[%c0_198, %c0_199, %c0_200], %464 {strides = array<i32>} : memref<1x8x24xf32, #tpu.memory_space<vmem>>, vector<1x8x24xf32>,
    return
  }
  func.func @transform_0(%arg0: i32, %arg1: memref<8x8xf32, #tpu.memory_space<smem>>) -> (i32, i32, i32) {
    %c0_i32 = arith.constant 0 : i32
    %c0_i32_0 = arith.constant 0 : i32
    %c0_i32_1 = arith.constant 0 : i32
    return %arg0, %c0_i32, %c0_i32_0 : i32, i32, i32
  }
  func.func @transform_1(%arg0: i32, %arg1: memref<8x8xf32, #tpu.memory_space<smem>>) -> (i32, i32) {
    %c0_i32 = arith.constant 0 : i32
    %c0_i32_0 = arith.constant 0 : i32
    %c0_i32_1 = arith.constant 0 : i32
    return %c0_i32, %c0_i32_0 : i32, i32
  }
  func.func @transform_2(%arg0: i32, %arg1: memref<8x8xf32, #tpu.memory_space<smem>>) -> (i32, i32) {
    %c0_i32 = arith.constant 0 : i32
    %c0_i32_0 = arith.constant 0 : i32
    %c0_i32_1 = arith.constant 0 : i32
    return %c0_i32, %c0_i32_0 : i32, i32
  }
  func.func @transform_3(%arg0: i32, %arg1: memref<8x8xf32, #tpu.memory_space<smem>>) -> (i32, i32) {
    %c0_i32 = arith.constant 0 : i32
    %c0_i32_0 = arith.constant 0 : i32
    %c0_i32_1 = arith.constant 0 : i32
    return %c0_i32, %c0_i32_0 : i32, i32
  }
  func.func @transform_4(%arg0: i32, %arg1: memref<8x8xf32, #tpu.memory_space<smem>>) -> (i32, i32) {
    %c0_i32 = arith.constant 0 : i32
    %c0_i32_0 = arith.constant 0 : i32
    %c0_i32_1 = arith.constant 0 : i32
    return %c0_i32, %c0_i32_0 : i32, i32
  }
  func.func @transform_5(%arg0: i32, %arg1: memref<8x8xf32, #tpu.memory_space<smem>>) -> (i32, i32) {
    %c0_i32 = arith.constant 0 : i32
    %c0_i32_0 = arith.constant 0 : i32
    %c0_i32_1 = arith.constant 0 : i32
    return %c0_i32, %c0_i32_0 : i32, i32
  }
  func.func @transform_6(%arg0: i32, %arg1: memref<8x8xf32, #tpu.memory_space<smem>>) -> (i32, i32) {
    %c0_i32 = arith.constant 0 : i32
    %c0_i32_0 = arith.constant 0 : i32
    %c0_i32_1 = arith.constant 0 : i32
    return %c0_i32, %c0_i32_0 : i32, i32
  }
  func.func @transform_7(%arg0: i32, %arg1: memref<8x8xf32, #tpu.memory_space<smem>>) -> (i32, i32) {
    %c0_i32 = arith.constant 0 : i32
    %c0_i32_0 = arith.constant 0 : i32
    %c0_i32_1 = arith.constant 0 : i32
    return %c0_i32, %c0_i32_0 : i32, i32
  }
  func.func @transform_8(%arg0: i32, %arg1: memref<8x8xf32, #tpu.memory_space<smem>>) -> (i32, i32, i32) {
    %c0_i32 = arith.constant 0 : i32
    %c0_i32_0 = arith.constant 0 : i32
    %c0_i32_1 = arith.constant 0 : i32
    %c0_i32_2 = arith.constant 0 : i32
    return %c0_i32, %c0_i32_0, %c0_i32_1 : i32, i32, i32
  }
  func.func @transform_9(%arg0: i32, %arg1: memref<8x8xf32, #tpu.memory_space<smem>>) -> (i32, i32) {
    %c0_i32 = arith.constant 0 : i32
    %c0_i32_0 = arith.constant 0 : i32
    %c0_i32_1 = arith.constant 0 : i32
    return %c0_i32, %c0_i32_0 : i32, i32
  }
  func.func @transform_10(%arg0: i32, %arg1: memref<8x8xf32, #tpu.memory_space<smem>>) -> (i32, i32, i32) {
    %c0_i32 = arith.constant 0 : i32
    %c0_i32_0 = arith.constant 0 : i32
    %c0_i32_1 = arith.constant 0 : i32
    return %arg0, %c0_i32, %c0_i32_0 : i32, i32, i32
  }
}

</mosaic_0001>

<bundles_post_ra>
// kernel: tpu_custom_call.1
= control target key start
LH: loop header
LB: loop body
LE: loop exit
PB: predicated region body
PF: predicated region fallthrough
CT: control target
= control target key end

     0   :  { %s3935_s0 = inlined_call_operand.hbm [shape: f32[8,8], index: 0, kind: input, shape index: {}]   ;;  %s3936_s1 = inlined_call_operand.vmem [shape: f32[2,8,24], index: 1, kind: input, shape index: {}]   ;;  %s3937_s2 = inlined_call_operand.vmem [shape: bf16[24,24], index: 2, kind: input, shape index: {}]   ;;  %s3938_s3 = inlined_call_operand.hbm [shape: bf16[24,24], index: 3, kind: input, shape index: {}]   ;;  %s3939_s4 = inlined_call_operand.hbm [shape: bf16[24,24], index: 4, kind: input, shape index: {}]   ;;  %s3940_s5 = inlined_call_operand.vmem [shape: f32[1,24], index: 5, kind: input, shape index: {}]   ;;  %s3941_s6 = inlined_call_operand.vmem [shape: f32[1,24], index: 6, kind: input, shape index: {}]   ;;  %s3942_s7 = inlined_call_operand.vmem [shape: f32[1,24], index: 7, kind: input, shape index: {}]   ;;  %s3943_s8 = inlined_call_operand.vmem [shape: f32[8,8], index: 8, kind: input, shape index: {}]   ;;  %s3944_s9 = inlined_call_operand.vmem [shape: bf16[8,3,24], index: 9, kind: input, shape index: {}]   ;;  %s3945_s10 = inlined_call_operand.vmem [shape: f32[1,24], index: 10, kind: input, shape index: {}]   ;;  %s3946_s11 = inlined_call_operand.hbm [shape: f32[2,8,24], index: 11, kind: output, shape index: {}]  }
   0x1   :  { %4006 = sst [smem:[#allocation58_spill]] %s3936_s1  ;;  %s2946_s19 = scalar_lea.hbm %s3935_s0, 128 }
   0x2   :  { %4007 = sst [smem:[#allocation59_spill]] %s3937_s2  ;;  %p2947_p0 = scmp.ne.s32.totalorder %s3935_s0, %s2946_s19 }
   0x3   :  { %4008 = sst [smem:[#allocation60_spill]] %s3938_s3  ;;  %p2950_p1 = scmp.lt.u32.totalorder %s2946_s19, %s3935_s0 }
   0x4   :  { %4009 = sst [smem:[#allocation61_spill]] %s3939_s4 }
   0x5   :  { %4010 = sst [smem:[#allocation62_spill]] %s3940_s5  ;;  %p2952_p2 = pnand %p2950_p1, %p2947_p0 }
   0x6   :  { %4011 = sst [smem:[#allocation63_spill]] %s3941_s6 }
   0x7   :  { %4012 = sst [smem:[#allocation64_spill]] %s3942_s7 }
   0x8   :  { %4013 = sst [smem:[#allocation65_spill]] %s3943_s8 }
   0x9   :  { %4014 = sst [smem:[#allocation66_spill]] %s3944_s9 }
   0xa   :  { %4015 = sst [smem:[#allocation67_spill]] %s3945_s10 }
   0xb   :  { %4016 = sst [smem:[#allocation68_spill]] %s3946_s11 }
   0xc   :  { %2955 = shalt.err (!%p2952_p2)  }
   0xd   :  { %s3086_s24 = smov [#allocation3]  }
   0xe   :  { %17 = dma.hbm_to_smem %s3935_s0, 128, %s3086_s24, [#allocation2] }
   0xf   :  { %3056 = dma.done.wait [#allocation2], 128 }
  0x10   :  { %3057 = vsyncadd [#allocation2], 4294967168 }
  0x11   :  { %19 = sfence }
  0x12   :  { %20 = vsyncpa [#allocation5], 0 }
  0x13   :  { %21 = vsyncpa [#allocation8], 0 }
  0x14   :  { %22 = vsyncpa [#allocation6], 0 }
  0x15   :  { %24 = vsyncpa [#allocation6 + $0x1], 0  ;;  %s3174_s27 = smov 0   ;;  %s3176_s28 = smov 0  }
  0x16   :  { %s3178_s29 = smov 0   ;;  %s3180_s30 = smov 0  }
  0x17 LB: > { %4017 = sst [smem:[#allocation14_spill]] %s3072_s27  ;;  %s3195_s0 = sadd.s32 4294967295, %s3084_s30   ;;  %s3084_s30 = sphi %s3180_s30, %s4163_s30   ;;  %s3080_s29 = sphi %s3178_s29, %s4166_s29   ;;  %s3076_s28 = sphi %s3176_s28, %s4165_s28   ;;  %s3072_s27 = sphi %s3174_s27, %s4164_s27  }
  0x18   : > { %4018 = sst [smem:[#allocation15_spill]] %s3076_s28  ;;  %s2473_s12 = sadd.s32 4294967294, %s3084_s30  }
  0x19   : > { %4019 = sst [smem:[#allocation16_spill]] %s3080_s29  ;;  %s3199_s13 = sadd.s32 1, %s3084_s30  }
  0x1a   : > { %4020 = sst [smem:[#allocation17_spill]] %s3084_s30  ;;  %s252_s14 = sadd.s32 1, %s3080_s29 }
  0x1b   : > { %4021 = sst [smem:[#allocation18_spill]] %s3195_s0  ;;  %s249_s15 = ssub.s32 %s3084_s30, %s3199_s13 }
  0x1c   : > { %4022 = sst [smem:[#allocation19_spill]] %s3199_s13  ;;  %p262_p3 = scmp.ne.s32.totalorder %s3080_s29, %s3076_s28 }
  0x1d   : > { %p250_p4 = scmp.eq.s32.totalorder %s249_s15, 0  ;;  %p263_p5 = scmp.eq.s32.totalorder %s3195_s0, 1 }
  0x1e   : > { %p268_p6 = scmp.ne.s32.totalorder %s3076_s28, %s3072_s27  ;;  %p269_p7 = scmp.eq.s32.totalorder %s2473_s12, 1 }
  0x1f   : > { %s3210_s16 = scalar_select %p250_p4, %s3080_s29, %s252_s14  }
  0x20   : > { %p3212_p8 = por %p263_p5, %p262_p3  ;;  %p3216_p9 = por %p269_p7, %p268_p6 }
  0x21   : > { %4023 = sst [smem:[#allocation20_spill]] %s3210_s16  ;;  %p2474_p10 = scmp.ge.s32.totalorder %s3084_s30, 1 }
  0x22   : > { %s4024_s17 = scalar_select %p3212_p8, 1, 0 }
  0x23   : > { %s4026_s18 = scalar_select %p3216_p9, 1, 0 }
  0x24   : > { %4025 = sst [smem:[#allocation21_spill]] %s4024_s17  ;;  %p276_p11 = scmp.lt.s32.totalorder %s3084_s30, 3 }
  0x25   : > { %4027 = sst [smem:[#allocation22_spill]] %s4026_s18  ;;  %p3947_p12 = scmp.eq.s32.totalorder %s3195_s0, 0 }
  0x26   : > { %p3223_p13 = pnand %p2474_p10, %p276_p11  ;;  %s3087_s20 = smov [#allocation4]  }
  0x27   : > { %s291_s21 = sshll.u32 %s3087_s20, 4  ;;  %s3088_s23 = smov [#allocation7]   ;;  %s292_s21 = int_to_ptr.vmem [resolvable:$true] %s291_s21 }
  0x28   : > { %s4028_s19 = scalar_select %p3223_p13, 1, 0 }
  0x29   : > { %p2829_p0 = pneg %p3223_p13  ;;  %s304_s24 = sshll.u32 %s3088_s23, 4  ;;  %s3235_s24 = int_to_ptr.vmem [resolvable:$true] %s304_s24 }
  0x2a   : > { %s4030_s3 = sld [smem:[#allocation60_spill]] }
  0x2b   : > { %p3231_p1 = pnand %p3947_p12, %p2829_p0 }
  0x2d   : > { %p2958_p3 = pneg %p3231_p1 }
  0x30   : > { %s2956_s12 = scalar_lea.hbm %s4030_s3, 192 }
  0x31   : > { %p2957_p2 = scmp.ne.s32.totalorder %s4030_s3, %s2956_s12  ;;  %p2963_p6 = scmp.lt.u32.totalorder %s2956_s12, %s4030_s3 }
  0x33   : > { %p2959_p4 = pnand %p2958_p3, %p2957_p2 }
  0x35   : > { %p2960_p5 = pneg %p2959_p4 }
  0x37   : > { %p2965_p7 = pnand %p2963_p6, %p2960_p5 }
  0x39   : > { %2968 = shalt.err (!%p2965_p7)
}
  0x3a   : > { %s2969_s23 = scalar_lea.vmem %s292_s21, 192  ;;  %p2977_p12 = scmp.lt.s32.totalorder %s292_s21, %s292_s21 }
  0x3b   : > { %p2970_p10 = scmp.ne.s32.totalorder %s292_s21, %s2969_s23  ;;  %p2978_p9 = scmp.lt.s32.totalorder %s2969_s23, %s2969_s23 }
  0x3d   : > { %p2972_p11 = pnand %p2970_p10, %p2958_p3  ;;  %p2979_p8 = por %p2978_p9, %p2977_p12 }
  0x3f   : > { %p2973_p0 = pneg %p2972_p11 }
  0x41   : > { %p2980_p13 = pnand %p2979_p8, %p2973_p0 }
  0x43   : > { %2983 = shalt.err (!%p2980_p13)
}
  0x44   : > { %s3089_s25 = smov 64   ;;  %s3090_s26 = smov 4  }
  0x45   : > { %2832 = dma.hbm_to_vmem [thread:$0]  (!%p3231_p1), %s4030_s3, 192, %s292_s21, [#allocation5], %s3089_s25, %s3089_s25, %s3090_s26  }
  0x46   : > { %s4031_s4 = sld [smem:[#allocation61_spill]] }
  0x4c   : > { %s2984_s20 = scalar_lea.hbm %s4031_s4, 192 }
  0x4d   : > { %p2985_p2 = scmp.ne.s32.totalorder %s4031_s4, %s2984_s20  ;;  %p2991_p12 = scmp.lt.u32.totalorder %s2984_s20, %s4031_s4 }
  0x4f   : > { %p2987_p8 = pnand %p2985_p2, %p2958_p3 }
  0x51   : > { %p2988_p9 = pneg %p2987_p8 }
  0x53   : > { %p2993_p13 = pnand %p2991_p12, %p2988_p9 }
  0x55   : > { %2996 = shalt.err (!%p2993_p13)
}
  0x56   : > { %s2997_s21 = scalar_lea.vmem %s3235_s24, 192  ;;  %p3005_p7 = scmp.lt.s32.totalorder %s3235_s24, %s3235_s24 }
  0x57   : > { %p2998_p4 = scmp.ne.s32.totalorder %s3235_s24, %s2997_s21  ;;  %p3006_p10 = scmp.lt.s32.totalorder %s2997_s21, %s2997_s21 }
  0x59   : > { %p3000_p5 = pnand %p2998_p4, %p2958_p3  ;;  %p3007_p11 = por %p3006_p10, %p3005_p7 }
  0x5b   : > { %p3001_p6 = pneg %p3000_p5 }
  0x5d   : > { %p3008_p0 = pnand %p3007_p11, %p3001_p6 }
  0x5f   : > { %3011 = shalt.err (!%p3008_p0)
}
  0x60   : > { %2835 = dma.hbm_to_vmem [thread:$0]  (!%p3231_p1), %s4031_s4, 192, %s3235_s24, [#allocation8], %s3089_s25, %s3089_s25, %s3090_s26  }
  0x61   : > { %p4032_p2 = scmp.ne.s32.totalorder %s4028_s19, 0 }
  0x63   : > { %345 = sbr.rel (%p4032_p2) target bundleno = 1610 (0x64a), region = 60 }
  0x6a   : > { %p4033_p8 = scmp.eq.s32.totalorder %s3195_s0, 0 }
  0x6c   : > { %3059 = dma.done.wait (%p4033_p8), [#allocation5], 192   ;;  %p4034_p3 = pmov %p4033_p8 }
  0x6e   : > { %3061 = vsyncadd (%p4034_p3), [#allocation5], 4294967104  ;;  %p4035_p9 = pmov %p4034_p3 }
  0x6f   : > { %p4036_p12 = pmov %p4034_p3 }
  0x70   : > { %3063 = dma.done.wait (%p4035_p9), [#allocation8], 192  }
  0x71   : > { %3065 = vsyncadd (%p4036_p12), [#allocation8], 4294967104  ;;  %p386_p13 = scmp.lt.s32.totalorder %s3195_s0, 1  ;;  %v4001_v0 = vmov 0.0   ;;  %vm3092_vm0 = vmmov 0   ;;  %s4037_s2 = sld [smem:[#allocation59_spill]]  ;;  %v1463_v48 = vlaneseq }
  0x72   : > { %2659 = vmatprep.subr.bf16.mxu0 %v4001_v0  ;;  %2667 = vmatprep.subr.bf16.mxu1 %v4001_v0  ;;  %s4038_s1 = sld [smem:[#allocation58_spill]]  ;;  %v2893_v2 = vld [vmem:[#allocation4] sm:$0xff]   ;;  %vm416_vm1 = vcmask 1043456   ;;  %v2895_v4 = vld [vmem:[#allocation4 + $0x8] ss:$0 sps:$4 sm:$0xff]   ;;  %vm412_vm2 = vcmask 195584  }
  0x73   : > { %2663 = vmatprep.mubr.msk.bf16.mxu0 %vm3092_vm0, %v4001_v0  ;;  %2671 = vmatprep.mubr.msk.bf16.mxu1 %vm3092_vm0, %v4001_v0  ;;  %s387_s18 = scalar_select %p386_p13, %s3195_s0, 1  ;;  %v480_v7 = vsel %vm416_vm1, %v2895_v4, 0  ;;  %v2896_v9 = vld [vmem:[#allocation7] sm:$0xff]   ;;  %v2897_v10 = vld [vmem:[#allocation7 + $0x8] ss:$0 sps:$4 sm:$0xff]   ;;  %vm584_vm3 = vcmask 23552  }
  0x74   : > { %2668 = vmatpush3.bf16.msra.mxu1 %v2893_v2  ;;  %v542_v11 = vsel %vm416_vm1, %v2897_v10, 0  ;;  %s4039_s5 = sld [smem:[#allocation62_spill]]  ;;  %s4040_s6 = sld [smem:[#allocation63_spill]]  ;;  %v3401_v49 = vshrl.u32 %v1463_v48, 7  ;;  %vm1472_vm4 = vcmask 64512   ;;  %vm1598_vm5 = vcmask 1040384  }
  0x75   : > { %s2482_s19 = sshll.u32 %s387_s18, 3  ;;  %2669 = vmatprep.subr.bf16.mxu1 %v4001_v0  ;;  %s3093_s29 = smov 125   ;;  %vm1599_vm6 = vcmask 1041408  }
  0x76   : > { %s3959_s13 = smov 119   ;;  %s3958_s18 = smov 122   ;;  %v2258_v51 = vsub.s32 7, %v3401_v49 }
  0x77   : > { %v2892_v1 = vld [vmem:[%s4037_s2] sm:$0xff]   ;;  %v2894_v3 = vld [vmem:[%s4037_s2 + $0x8] ss:$0 sps:$4 sm:$0xff]   ;;  %s3956_s22 = smov 113   ;;  %s3955_s24 = smov 110  }
  0x78   : > { %s389_s16 = scalar_lea.vmem %s4038_s1, %s2482_s19  ;;  %2660 = vmatpush3.bf16.msra.mxu0 %v2892_v1  ;;  %v418_v6 = vsel %vm416_vm1, %v2894_v3, 0  ;;  %2670 = vmatpush3.bf16.msra.mxu1 %v480_v7  ;;  %s3957_s19 = smov 116  }
  0x79   : > { %2661 = vmatprep.subr.bf16.mxu0 %v4001_v0  ;;  %v391_v5 = vld [vmem:[%s389_s16] sm:$0xff]  ;;  %2683 = vmatprep.subr.mxu1 %v4001_v0  ;;  %s3954_s25 = smov 107   ;;  %s4041_s7 = sld [smem:[#allocation64_spill]] }
  0x7a   : > { %v392_v8 = vpack.c.bf16 %v391_v5, %v391_v5  ;;  %v2483_v12 = vld [vmem:[%s4039_s5] ss:$0 sm:$0xff]  ;;  %s4042_s8 = sld [smem:[#allocation65_spill]]  ;;  %s3412_s15 = sld [smem:[#allocation3]] }
  0x7b   : > { %v2487_v13 = vld [vmem:[%s4040_s6] ss:$0 sm:$0xff]  ;;  %s3414_s20 = sld [smem:[#allocation3 + $0x80]]  ;;  %s3428_s14 = sld [smem:[#allocation3 + $0x1]] }
  0x7c   : > { %2662 = vmatpush3.bf16.msra.mxu0 %v418_v6  ;;  %2672 = vmatmul.mubr.msk.bf16.vlgmr.msra.gmra.mrb[0].mxu1 %vm412_vm2, %v392_v8  ;;  %s3416_s23 = sld [smem:[#allocation3 + $0x100]]  ;;  %s3442_s1 = sld [smem:[#allocation3 + $0x381]] }
  0x7d   : > { %2675 = vmatprep.subr.bf16.mxu0 %v4001_v0  ;;  %2685 = vmatprep.mubr.msk.f32.mxu1 %vm3092_vm0, %v4001_v0  ;;  %s3418_s21 = sld [smem:[#allocation3 + $0x180]]  ;;  %s3444_s2 = sld [smem:[#allocation3 + $0x2]] }
  0x7e   : > { %s3422_s26 = sld [smem:[#allocation3 + $0x280]]  ;;  %s3446_s3 = sld [smem:[#allocation3 + $0x82]] }
  0x7f   : > { %2664 = vmatmul.mubr.msk.bf16.vlgmr.msra.gmra.mrb[0].mxu0 %vm412_vm2, %v392_v8  ;;  %v2491_v40 = vld [vmem:[%s4041_s7] ss:$0 sm:$0xff]  ;;  %s3424_s16 = sld [smem:[#allocation3 + $0x300]]  ;;  %s3448_s4 = sld [smem:[#allocation3 + $0x102]] }
  0x80   : > { %2679 = vmatprep.mubr.msk.bf16.mxu0 %vm3092_vm0, %v4001_v0  ;;  %2676 = vmatpush3.bf16.msra.mxu0 %v2896_v9  ;;  %v3406_v50 = vld [vmem:[%s4042_s8] sm:$0xff]  ;;  %s3426_s12 = sld [smem:[#allocation3 + $0x380]]  ;;  %s3450_s5 = sld [smem:[#allocation3 + $0x182]]  ;;  %v1208_v53 = vstv %s3412_s15 }
  0x81   : > { %2677 = vmatprep.subr.bf16.mxu0 %v4001_v0  ;;  %v3410_v52 = vrot.slane %v3406_v50, %v2258_v51  ;;  %4043 = sst [smem:[#allocation23_spill]] %s3428_s14  ;;  %s3452_s6 = sld [smem:[#allocation3 + $0x202]]  ;;  %v1239_v54 = vstv %s3414_s20  ;;  %v1211_v61 = vstv %s3428_s14 }
  0x82   : > { %4049 = sst [smem:[#allocation29_spill]] %s3442_s1  ;;  %s3460_s30 = sld [smem:[#allocation3 + $0x3]]  ;;  %v1270_v55 = vstv %s3416_s23  ;;  %v1428_v5 = vstv %s3442_s1 }
  0x83   : > { %4050 = sst [smem:[#allocation30_spill]] %s3444_s2  ;;  %s3454_s7 = sld [smem:[#allocation3 + $0x282]]  ;;  %v1301_v56 = vstv %s3418_s21  ;;  %v1215_v6 = vstv %s3444_s2 }
  0x84   : > { %2678 = vmatpush3.bf16.msra.mxu0 %v542_v11  ;;  %s3456_s8 = sld [smem:[#allocation3 + $0x302]]  ;;  %s3462_s11 = sld [smem:[#allocation3 + $0x83]]  ;;  %v1363_v58 = vstv %s3422_s26  ;;  %v1246_v7 = vstv %s3446_s3 }
  0x85   : > { %2693 = vmatprep.subr.mxu0 %v4001_v0  ;;  %4051 = sst [smem:[#allocation31_spill]] %s3448_s4  ;;  %s3458_s27 = sld [smem:[#allocation3 + $0x382]]  ;;  %v1394_v59 = vstv %s3424_s16 }
  0x86   : > { %4052 = sst [smem:[#allocation32_spill]] %s3450_s5  ;;  %s3464_s17 = sld [smem:[#allocation3 + $0x103]]  ;;  %v1425_v60 = vstv %s3426_s12  ;;  %v1308_v9 = vstv %s3450_s5 }
  0x87   : > { %2680 = vmatmul.mubr.msk.bf16.vlgmr.msra.gmra.mrb[4].mxu0 %vm412_vm2, %v392_v8  ;;  %4053 = sst [smem:[#allocation33_spill]] %s3452_s6  ;;  %s3466_s10 = sld [smem:[#allocation3 + $0x183]]  ;;  %v1277_v8 = vstv %s3448_s4  ;;  %v1339_v10 = vstv %s3452_s6 }
  0x88   : > { %2695 = vmatprep.mubr.msk.f32.mxu0 %vm3092_vm0, %v4001_v0  ;;  %4057 = sst [smem:[#allocation37_spill]] %s3460_s30  ;;  %s3468_s0 = sld [smem:[#allocation3 + $0x203]] }
  0x89   : > { %4054 = sst [smem:[#allocation34_spill]] %s3454_s7  ;;  %s3470_s28 = sld [smem:[#allocation3 + $0x283]]  ;;  %v1370_v11 = vstv %s3454_s7 }
  0x8a   : > { %4055 = sst [smem:[#allocation35_spill]] %s3456_s8  ;;  %s3472_s9 = sld [smem:[#allocation3 + $0x303]] }
  0x8b   : > { %4056 = sst [smem:[#allocation36_spill]] %s3458_s27  ;;  %s3474_s27 = sld [smem:[#allocation3 + $0x383]] }
  0x8c   : > { %4058 = sst [smem:[#allocation38_spill]] %s3462_s11  ;;  %s3476_s30 = sld [smem:[#allocation3 + $0x4]] }
  0x8d   : > { %4059 = sst [smem:[#allocation39_spill]] %s3464_s17  ;;  %s3509_s15 = sld [smem:[#allocation3 + $0x205]] }
  0x8e   : > { %4060 = sst [smem:[#allocation40_spill]] %s3466_s10  ;;  %s3478_s8 = sld [smem:[#allocation3 + $0x84]] }
  0x8f   : > { %4061 = sst [smem:[#allocation41_spill]] %s3468_s0  ;;  %s3480_s17 = sld [smem:[#allocation3 + $0x104]] }
  0x90   : > { %4062 = sst [smem:[#allocation42_spill]] %s3470_s28  ;;  %s3482_s10 = sld [smem:[#allocation3 + $0x184]] }
  0x91   : > { %4063 = sst [smem:[#allocation43_spill]] %s3472_s9  ;;  %s3484_s0 = sld [smem:[#allocation3 + $0x204]] }
  0x92   : > { %s3486_s28 = sld [smem:[#allocation3 + $0x284]]  ;;  %s3511_s20 = sld [smem:[#allocation3 + $0x285]] }
  0x93   : > { %s3488_s9 = sld [smem:[#allocation3 + $0x304]]  ;;  %s4074_s23 = sld [smem:[#allocation35_spill]] }
  0x94   : > { %4064 = sst [smem:[#allocation44_spill]] %s3478_s8  ;;  %s3490_s11 = sld [smem:[#allocation3 + $0x384]] }
  0x95   : > { %4065 = sst [smem:[#allocation45_spill]] %s3480_s17  ;;  %s3493_s8 = sld [smem:[#allocation3 + $0x5]] }
  0x96   : > { %s3495_s17 = sld [smem:[#allocation3 + $0x85]]  ;;  %s4078_s16 = sld [smem:[#allocation37_spill]] }
  0x97   : > { %s3517_s21 = sld [smem:[#allocation3 + $0x305]]  ;;  %s4079_s12 = sld [smem:[#allocation38_spill]] }
  0x98   : > { %4066 = sst [smem:[#allocation46_spill]] %s3486_s28  ;;  %s3501_s28 = sld [smem:[#allocation3 + $0x105]] }
  0x99   : > { %4067 = sst [smem:[#allocation47_spill]] %s3488_s9  ;;  %s3503_s9 = sld [smem:[#allocation3 + $0x185]] }
  0x9a   : > { %4068 = sst [smem:[#allocation48_spill]] %s3490_s11  ;;  %s4080_s14 = sld [smem:[#allocation39_spill]] }
  0x9b   : > { %4069 = sst [smem:[#allocation49_spill]] %s3493_s8  ;;  %s3519_s26 = sld [smem:[#allocation3 + $0x385]] }
  0x9c   : > { %4070 = sst [smem:[#allocation50_spill]] %s3495_s17  ;;  %s3541_s2 = sld [smem:[#allocation3 + $0x206]] }
  0x9d   : > { %4073 = sst [smem:[#allocation53_spill]] %s3511_s20  ;;  %s3525_s20 = sld [smem:[#allocation3 + $0x6]] }
  0x9e   : > { %4071 = sst [smem:[#allocation51_spill]] %s3501_s28  ;;  %s3543_s1 = sld [smem:[#allocation3 + $0x286]] }
  0x9f   : > { %4072 = sst [smem:[#allocation52_spill]] %s3503_s9  ;;  %s3549_s5 = sld [smem:[#allocation3 + $0x306]] }
  0xa0   : > { %4075 = sst [smem:[#allocation54_spill]] %s3517_s21  ;;  %s3535_s21 = sld [smem:[#allocation3 + $0x186]] }
  0xa1   : > { %4077 = sst [smem:[#allocation55_spill]] %s3519_s26  ;;  %s4083_s26 = sld [smem:[#allocation42_spill]] }
  0xa2   : > { %s3551_s6 = sld [smem:[#allocation3 + $0x386]]  ;;  %s4125_s4 = sld [smem:[#allocation54_spill]] }
 0x14f   : > { %v516_v16 = vpop.f32.mrb[0].mxu1 }
 0x150   : > { %v517_v18 = vadd.f32 %v2487_v13, %v516_v16  ;;  %v2673_v19 = vpop.f32.mrb[1].mxu1  ;;  %v1281_v16 = vstv %s4080_s14  ;;  %s4089_s14 = sld [smem:[#allocation47_spill]] }
 0x151   : > { %v519_v21 = vpop.f32.mrb[2].mxu1 }
 0x152   : > { %v454_v14 = vpop.f32.mrb[0].mxu0  ;;  %663 = vrot.lane.b32.xlu0 %v517_v18, %s3093_s29  ;;  %v2674_v23 = vpop.f32.mrb[3].mxu1  ;;  %2684 = vmatpush3.xpose.msk.msra.mxu1 %vm584_vm3, %v517_v18  ;;  %v1374_v21 = vstv %s4083_s26  ;;  %s3565_s26 = sld [smem:[#allocation3 + $0x187]] }
 0x153   : > { %v455_v15 = vadd.f32 %v2483_v12, %v454_v14  ;;  %v2665_v17 = vpop.f32.mrb[1].mxu0  ;;  %2688 = vmatprep.subr.mxu1 %v4001_v0  ;;  %v1401_v12 = vstv %s4074_s23  ;;  %v1219_v14 = vstv %s4078_s16  ;;  %s4085_s23 = sld [smem:[#allocation44_spill]]  ;;  %s4086_s16 = sld [smem:[#allocation45_spill]] }
 0x154   : > { %v457_v20 = vpop.f32.mrb[2].mxu0 }
 0x155   : > { %661 = vrot.lane.b32.xlu1 %v455_v15, %s3093_s29  ;;  %v2666_v22 = vpop.f32.mrb[3].mxu0  ;;  %2686 = vmatmul.mubr.msk.f32.vlgmr.msra.gmra.mrb[4].mxu1 %vm584_vm3, %v455_v15 }
 0x156   : > { %741 = vrot.lane.b32.xlu0 %v517_v18, %s3958_s18  ;;  %2690 = vmatprep.mubr.msk.f32.mxu1 %vm3092_vm0, %v4001_v0 }
 0x158   : > { %4090 = sst [smem:[#allocation56_spill]] %s3565_s26 }
 0x159   : > { %819 = vrot.lane.b32.xlu1 %v517_v18, %s3959_s13 }
 0x15a   : > { %739 = vrot.lane.b32.xlu0 %v455_v15, %s3958_s18  ;;  %v578_v38 = vpop.f32.mrb[4].mxu0  ;;  %s3438_s18 = sld [smem:[#allocation3 + $0x281]] }
 0x15b   : > { %v2681_v39 = vpop.f32.mrb[5].mxu0  ;;  %v579_v42 = vadd.f32 %v2491_v40, %v578_v38  ;;  %v1227_v38 = vstv %s3493_s8  ;;  %v1258_v40 = vstv %s3495_s17  ;;  %s3593_s17 = sld [smem:[#allocation3 + $0x387]] }
 0x15c   : > { %v581_v41 = vpop.f32.mrb[6].mxu0 }
 0x15d   : > { %897 = vrot.lane.b32.xlu1 %v517_v18, %s3957_s19  ;;  %v2682_v43 = vpop.f32.mrb[7].mxu0  ;;  %v3392_v44 = vpack.c.bf16 %v579_v42, %v579_v42  ;;  %v1289_v41 = vstv %s3501_s28  ;;  %v1320_v42 = vstv %s3503_s9  ;;  %s3595_s9 = sld [smem:[#allocation3 + $0x87]] }
 0x15e   : > { %817 = vrot.lane.b32.xlu0 %v455_v15, %s3959_s13  ;;  %s3440_s13 = sld [smem:[#allocation3 + $0x301]] }
 0x15f   : > { %v1484_v45 = vsel %vm416_vm1, %v3392_v44, 0 }
 0x160   : > { %v1366_v3 = vstv %s3438_s18  ;;  %s4154_s18 = sld [smem:[#allocation18_spill]] }
 0x161   : > { %975 = vrot.lane.b32.xlu1 %v517_v18, %s3956_s22 }
 0x162   : > { %895 = vrot.lane.b32.xlu0 %v455_v15, %s3957_s19  ;;  %s3436_s19 = sld [smem:[#allocation3 + $0x201]] }
 0x164   : > { %4048 = sst [smem:[#allocation28_spill]] %s3440_s13  ;;  %v1397_v4 = vstv %s3440_s13  ;;  %s4084_s13 = sld [smem:[#allocation43_spill]] }
 0x165   : > { %1053 = vrot.lane.b32.xlu1 %v517_v18, %s3955_s24 }
 0x166   : > { %973 = vrot.lane.b32.xlu0 %v455_v15, %s3956_s22  ;;  %s3434_s22 = sld [smem:[#allocation3 + $0x181]] }
 0x168   : > { %4047 = sst [smem:[#allocation27_spill]] %s3436_s19  ;;  %v1335_v2 = vstv %s3436_s19  ;;  %s3533_s19 = sld [smem:[#allocation3 + $0x106]] }
 0x169   : > { %1131 = vrot.lane.b32.xlu1 %v517_v18, %s3954_s25 }
 0x16a   : > { %1051 = vrot.lane.b32.xlu0 %v455_v15, %s3955_s24  ;;  %s3432_s24 = sld [smem:[#allocation3 + $0x101]]  ;;  %v1405_v22 = vstv %s4084_s13  ;;  %s3567_s13 = sld [smem:[#allocation3 + $0x207]] }
 0x16c   : > { %4046 = sst [smem:[#allocation26_spill]] %s3434_s22  ;;  %v1304_v1 = vstv %s3434_s22  ;;  %s4082_s22 = sld [smem:[#allocation41_spill]] }
 0x16d   : > { %1129 = vrot.lane.b32.xlu1 %v455_v15, %s3954_s25  ;;  %s3430_s25 = sld [smem:[#allocation3 + $0x81]]  ;;  %v1250_v15 = vstv %s4079_s12  ;;  %s3557_s12 = sld [smem:[#allocation3 + $0x7]] }
 0x170   : > { %4045 = sst [smem:[#allocation25_spill]] %s3432_s24  ;;  %v1273_v63 = vstv %s3432_s24 }
 0x171   : > { %1544 = vrot.lane.b32.xlu1 %v3392_v44, %s3093_s29  ;;  %s3420_s29 = sld [smem:[#allocation3 + $0x200]]  ;;  %s3527_s24 = sld [smem:[#allocation3 + $0x86]] }
 0x172   : > { %v1343_v18 = vstv %s4082_s22  ;;  %s3559_s22 = sld [smem:[#allocation3 + $0x107]]  ;;  %4091 = sst [smem:[#allocation57_spill]] %s3567_s13 }
 0x173   : > { %4044 = sst [smem:[#allocation24_spill]] %s3430_s25  ;;  %v1242_v62 = vstv %s3430_s25 }
 0x174   : > { %s4081_s25 = sld [smem:[#allocation40_spill]] }
 0x177   : > { %v1332_v57 = vstv %s3420_s29  ;;  %s4076_s29 = sld [smem:[#allocation36_spill]] }
 0x17a   : > { %v1312_v17 = vstv %s4081_s25  ;;  %s4087_s25 = sld [smem:[#allocation46_spill]] }
 0x17b   : > { %4088 = sst [smem:[#allocation46_spill]] %s3559_s22 }
 0x17d   : > { %v1432_v13 = vstv %s4076_s29  ;;  %s4153_s29 = sld [smem:[#allocation15_spill]] }
 0x1c4   : > { %v664_v25 = vpop.permute.xlu0 %663 }
 0x1c5   : > { %2689 = vmatpush3.xpose.msk.msra.mxu1 %vm584_vm3, %v664_v25 }
 0x1c6   : > { %2698 = vmatprep.subr.mxu1 %v4001_v0 }
 0x1c7   : > { %v662_v24 = vpop.permute.xlu1 %661 }
 0x1c8   : > { %v742_v27 = vpop.permute.xlu0 %741  ;;  %2691 = vmatmul.mubr.msk.f32.vlgmr.msra.gmra.mrb[6].mxu1 %vm584_vm3, %v662_v24 }
 0x1c9   : > { %2694 = vmatpush3.xpose.msk.msra.mxu0 %vm584_vm3, %v742_v27  ;;  %2700 = vmatprep.mubr.msk.f32.mxu1 %vm3092_vm0, %v4001_v0 }
 0x1ca   : > { %2703 = vmatprep.subr.mxu0 %v4001_v0 }
 0x1cb   : > { %v820_v26 = vpop.permute.xlu1 %819 }
 0x1cc   : > { %2699 = vmatpush3.xpose.msk.msra.mxu1 %vm584_vm3, %v820_v26  ;;  %v740_v29 = vpop.permute.xlu0 %739 }
 0x1cd   : > { %2708 = vmatprep.subr.mxu1 %v4001_v0  ;;  %2696 = vmatmul.mubr.msk.f32.vlgmr.msra.gmra.mrb[8].mxu0 %vm584_vm3, %v740_v29  ;;  %v1436_v29 = vstv %s3474_s27 }
 0x1ce   : > { %2705 = vmatprep.mubr.msk.f32.mxu0 %vm3092_vm0, %v4001_v0 }
 0x1cf   : > { %v898_v28 = vpop.permute.xlu1 %897 }
 0x1d0   : > { %2704 = vmatpush3.xpose.msk.msra.mxu0 %vm584_vm3, %v898_v28  ;;  %v818_v31 = vpop.permute.xlu0 %817 }
 0x1d1   : > { %2713 = vmatprep.subr.mxu0 %v4001_v0  ;;  %2701 = vmatmul.mubr.msk.f32.vlgmr.msra.gmra.mrb[8].mxu1 %vm584_vm3, %v818_v31  ;;  %v1254_v31 = vstv %s4085_s23  ;;  %s3584_s23 = sld [smem:[#allocation3 + $0x287]] }
 0x1d2   : > { %2710 = vmatprep.mubr.msk.f32.mxu1 %vm3092_vm0, %v4001_v0 }
 0x1d3   : > { %v976_v30 = vpop.permute.xlu1 %975 }
 0x1d4   : > { %2709 = vmatpush3.xpose.msk.msra.mxu1 %vm584_vm3, %v976_v30  ;;  %v896_v33 = vpop.permute.xlu0 %895  ;;  %v1223_v30 = vstv %s3476_s30  ;;  %s4124_s30 = sld [smem:[#allocation53_spill]] }
 0x1d5   : > { %2718 = vmatprep.subr.mxu1 %v4001_v0  ;;  %2706 = vmatmul.mubr.msk.f32.vlgmr.msra.gmra.mrb[10].mxu0 %vm584_vm3, %v896_v33  ;;  %v1316_v33 = vstv %s3482_s10  ;;  %s4126_s10 = sld [smem:[#allocation55_spill]] }
 0x1d6   : > { %2715 = vmatprep.mubr.msk.f32.mxu0 %vm3092_vm0, %v4001_v0 }
 0x1d7   : > { %v1054_v32 = vpop.permute.xlu1 %1053 }
 0x1d8   : > { %2714 = vmatpush3.xpose.msk.msra.mxu0 %vm584_vm3, %v1054_v32  ;;  %v974_v35 = vpop.permute.xlu0 %973  ;;  %v1285_v32 = vstv %s4086_s16  ;;  %s3586_s16 = sld [smem:[#allocation3 + $0x307]] }
 0x1d9   : > { %2723 = vmatprep.subr.bf16.mxu0 %v4001_v0  ;;  %2711 = vmatmul.mubr.msk.f32.vlgmr.msra.gmra.mrb[10].mxu1 %vm584_vm3, %v974_v35  ;;  %v1378_v35 = vstv %s4087_s25  ;;  %s4135_s25 = sld [smem:[#allocation56_spill]] }
 0x1da   : > { %2720 = vmatprep.mubr.msk.f32.mxu1 %vm3092_vm0, %v4001_v0 }
 0x1db   : > { %v1132_v34 = vpop.permute.xlu1 %1131 }
 0x1dc   : > { %2719 = vmatpush3.xpose.msk.msra.mxu1 %vm584_vm3, %v1132_v34  ;;  %v1052_v37 = vpop.permute.xlu0 %1051  ;;  %v1347_v34 = vstv %s3484_s0  ;;  %s4134_s0 = sld [smem:[#allocation46_spill]] }
 0x1dd   : > { %2729 = vmatprep.subr.bf16.mxu1 %v4001_v0  ;;  %2716 = vmatmul.mubr.msk.f32.vlgmr.msra.gmra.mrb[12].mxu0 %vm584_vm3, %v1052_v37  ;;  %v1440_v37 = vstv %s3490_s11 }
 0x1de   : > { %2725 = vmatprep.mubr.msk.bf16.mxu0 %vm3092_vm0, %v4001_v0  ;;  %2724 = vmatpush3.bf16.msra.mxu0 %v1484_v45  ;;  %v1351_v45 = vstv %s3509_s15  ;;  %s4136_s15 = sld [smem:[#allocation57_spill]] }
 0x1df   : > { %v1130_v36 = vpop.permute.xlu1 %1129  ;;  %2735 = vmatprep.subr.bf16.mxu0 %v4001_v0 }
 0x1e0   : > { %2721 = vmatmul.mubr.msk.f32.vlgmr.msra.gmra.mrb[12].mxu1 %vm584_vm3, %v1130_v36  ;;  %v1409_v36 = vstv %s4089_s14 }
 0x1e1   : > { %2731 = vmatprep.mubr.msk.bf16.mxu1 %vm3092_vm0, %v4001_v0 }
 0x1e3   : > { %v1545_v39 = vpop.permute.xlu1 %1544 }
 0x1e4   : > { %v1550_v43 = vsel %vm416_vm1, %v1545_v39, 0 }
 0x1e5   : > { %2730 = vmatpush3.bf16.msra.mxu1 %v1550_v43 }
 0x1e6   : > { %2741 = vmatprep.subr.bf16.mxu1 %v4001_v0 }
 0x228   : > { %v3398_v46 = vpop.f32.mrb[4].mxu1 }
 0x229   : > { %v2687_v47 = vpop.f32.mrb[5].mxu1  ;;  %v1209_v19 = vmul.f32 %v1208_v53, %v3398_v46  ;;  %v1240_v20 = vmul.f32 %v1239_v54, %v3398_v46  ;;  %v1271_v23 = vmul.f32 %v1270_v55, %v3398_v46  ;;  %v1302_v24 = vmul.f32 %v1301_v56, %v3398_v46 }
 0x22a   : > { %v1333_v25 = vmul.f32 %v1332_v57, %v3398_v46  ;;  %v1364_v26 = vmul.f32 %v1363_v58, %v3398_v46  ;;  %v1395_v27 = vmul.f32 %v1394_v59, %v3398_v46  ;;  %v1426_v28 = vmul.f32 %v1425_v60, %v3398_v46 }
 0x22b   : > { %v1390_v57 = vstv %s3584_s23  ;;  %v1452_v47 = vstv %s3593_s17  ;;  %v1266_v46 = vstv %s3595_s9  ;;  %s4149_s9 = smov 110   ;;  %s4150_s17 = smov 107  }
 0x29b   : > { %v735_v60 = vpop.f32.mrb[6].mxu1 }
 0x29c   : > { %v1212_v53 = vmul.f32 %v1211_v61, %v735_v60  ;;  %v1243_v54 = vmul.f32 %v1242_v62, %v735_v60  ;;  %v1274_v55 = vmul.f32 %v1273_v63, %v735_v60  ;;  %v1305_v0 = vmul.f32 %v1304_v1, %v735_v60  ;;  %v2692_v56 = vpop.f32.mrb[7].mxu1 }
 0x29d   : > { %v1336_v58 = vmul.f32 %v1335_v2, %v735_v60  ;;  %v1367_v39 = vmul.f32 %v1366_v3, %v735_v60  ;;  %v1398_v51 = vmul.f32 %v1397_v4, %v735_v60  ;;  %v1429_v61 = vmul.f32 %v1428_v5, %v735_v60 }
 0x29e   : > { %v1213_v62 = vadd.f32 %v1212_v53, %v1209_v19  ;;  %v1244_v63 = vadd.f32 %v1243_v54, %v1240_v20  ;;  %v1275_v48 = vadd.f32 %v1274_v55, %v1271_v23  ;;  %v1306_v1 = vadd.f32 %v1305_v0, %v1302_v24 }
 0x29f   : > { %v1337_v56 = vadd.f32 %v1336_v58, %v1333_v25  ;;  %v1368_v2 = vadd.f32 %v1367_v39, %v1364_v26  ;;  %v1399_v43 = vadd.f32 %v1398_v51, %v1395_v27  ;;  %v1430_v3 = vadd.f32 %v1429_v61, %v1426_v28 }
 0x2a0   : > { %v813_v59 = vpop.f32.mrb[8].mxu0  ;;  %v1421_v4 = vstv %s3586_s16 }
 0x2a1   : > { %v1216_v5 = vmul.f32 %v1215_v6, %v813_v59  ;;  %v1247_v19 = vmul.f32 %v1246_v7, %v813_v59  ;;  %v1278_v20 = vmul.f32 %v1277_v8, %v813_v59  ;;  %v1309_v0 = vmul.f32 %v1308_v9, %v813_v59  ;;  %v2697_v23 = vpop.f32.mrb[9].mxu0 }
 0x2a2   : > { %v1340_v24 = vmul.f32 %v1339_v10, %v813_v59  ;;  %v1371_v25 = vmul.f32 %v1370_v11, %v813_v59  ;;  %v1402_v26 = vmul.f32 %v1401_v12, %v813_v59  ;;  %v1433_v6 = vmul.f32 %v1432_v13, %v813_v59 }
 0x2a3   : > { %v1217_v7 = vadd.f32 %v1216_v5, %v1213_v62  ;;  %v1248_v8 = vadd.f32 %v1247_v19, %v1244_v63  ;;  %v1279_v27 = vadd.f32 %v1278_v20, %v1275_v48  ;;  %v1310_v9 = vadd.f32 %v1309_v0, %v1306_v1 }
 0x2a4   : > { %v1341_v28 = vadd.f32 %v1340_v24, %v1337_v56  ;;  %v1372_v51 = vadd.f32 %v1371_v25, %v1368_v2  ;;  %v1403_v53 = vadd.f32 %v1402_v26, %v1399_v43  ;;  %v1434_v54 = vadd.f32 %v1433_v6, %v1430_v3  ;;  %v891_v10 = vpop.f32.mrb[8].mxu1 }
 0x2a5   : > { %v1220_v55 = vmul.f32 %v1219_v14, %v891_v10  ;;  %v1251_v11 = vmul.f32 %v1250_v15, %v891_v10  ;;  %v1282_v12 = vmul.f32 %v1281_v16, %v891_v10  ;;  %v1313_v13 = vmul.f32 %v1312_v17, %v891_v10  ;;  %v2702_v58 = vpop.f32.mrb[9].mxu1 }
 0x2a6   : > { %v1344_v48 = vmul.f32 %v1343_v18, %v891_v10  ;;  %v1375_v59 = vmul.f32 %v1374_v21, %v891_v10  ;;  %v1406_v60 = vmul.f32 %v1405_v22, %v891_v10  ;;  %v1437_v14 = vmul.f32 %v1436_v29, %v891_v10 }
 0x2a7   : > { %v1221_v15 = vadd.f32 %v1220_v55, %v1217_v7  ;;  %v1252_v16 = vadd.f32 %v1251_v11, %v1248_v8  ;;  %v1283_v39 = vadd.f32 %v1282_v12, %v1279_v27  ;;  %v1314_v17 = vadd.f32 %v1313_v13, %v1310_v9 }
 0x2a8   : > { %v1345_v43 = vadd.f32 %v1344_v48, %v1341_v28  ;;  %v1376_v61 = vadd.f32 %v1375_v59, %v1372_v51  ;;  %v1407_v62 = vadd.f32 %v1406_v60, %v1403_v53  ;;  %v1438_v63 = vadd.f32 %v1437_v14, %v1434_v54  ;;  %v969_v18 = vpop.f32.mrb[10].mxu0 }
 0x2a9   : > { %v1224_v1 = vmul.f32 %v1223_v30, %v969_v18  ;;  %v1255_v21 = vmul.f32 %v1254_v31, %v969_v18  ;;  %v1286_v22 = vmul.f32 %v1285_v32, %v969_v18  ;;  %v1317_v29 = vmul.f32 %v1316_v33, %v969_v18  ;;  %v2707_v56 = vpop.f32.mrb[11].mxu0 }
 0x2aa   : > { %v1348_v2 = vmul.f32 %v1347_v34, %v969_v18  ;;  %v1379_v3 = vmul.f32 %v1378_v35, %v969_v18  ;;  %v1410_v5 = vmul.f32 %v1409_v36, %v969_v18  ;;  %v1441_v30 = vmul.f32 %v1440_v37, %v969_v18 }
 0x2ab   : > { %v1225_v31 = vadd.f32 %v1224_v1, %v1221_v15  ;;  %v1256_v32 = vadd.f32 %v1255_v21, %v1252_v16  ;;  %v1287_v19 = vadd.f32 %v1286_v22, %v1283_v39  ;;  %v1318_v33 = vadd.f32 %v1317_v29, %v1314_v17 }
 0x2ac   : > { %v1349_v20 = vadd.f32 %v1348_v2, %v1345_v43  ;;  %v1380_v0 = vadd.f32 %v1379_v3, %v1376_v61  ;;  %v1411_v23 = vadd.f32 %v1410_v5, %v1407_v62  ;;  %v1442_v24 = vadd.f32 %v1441_v30, %v1438_v63  ;;  %v1047_v34 = vpop.f32.mrb[10].mxu1 }
 0x2ad   : > { %v1228_v25 = vmul.f32 %v1227_v38, %v1047_v34  ;;  %v1259_v35 = vmul.f32 %v1258_v40, %v1047_v34  ;;  %v1290_v36 = vmul.f32 %v1289_v41, %v1047_v34  ;;  %v1321_v37 = vmul.f32 %v1320_v42, %v1047_v34  ;;  %v2712_v26 = vpop.f32.mrb[11].mxu1 }
 0x2ae   : > { %v1352_v6 = vmul.f32 %v1351_v45, %v1047_v34  ;;  %v4127_v7 = vstv %s4124_s30  ;;  %v4128_v27 = vstv %s4125_s4  ;;  %v4129_v28 = vstv %s4126_s10  ;;  %s383_s30 = sand.u32 1, %s4153_s29  }
 0x2af   : > { %v1383_v8 = vmul.f32 %v4127_v7, %v1047_v34  ;;  %v1414_v9 = vmul.f32 %v4128_v27, %v1047_v34  ;;  %v1445_v51 = vmul.f32 %v4129_v28, %v1047_v34  ;;  %v1229_v38 = vadd.f32 %v1228_v25, %v1225_v31  ;;  %s2481_s4 = sshll.u32 %s383_s30, 3 }
 0x2b0   : > { %v1291_v40 = vadd.f32 %v1290_v36, %v1287_v19  ;;  %v1322_v41 = vadd.f32 %v1321_v37, %v1318_v33  ;;  %v1260_v42 = vadd.f32 %v1259_v35, %v1256_v32  ;;  %v1353_v53 = vadd.f32 %v1352_v6, %v1349_v20  ;;  %v1125_v55 = vpop.f32.mrb[12].mxu0 }
 0x2b1   : > { %v1384_v54 = vadd.f32 %v1383_v8, %v1380_v0  ;;  %v1415_v10 = vadd.f32 %v1414_v9, %v1411_v23  ;;  %v1446_v45 = vadd.f32 %v1445_v51, %v1442_v24  ;;  %v4130_v12 = vstv %s3525_s20  ;;  %v2717_v16 = vpop.f32.mrb[13].mxu0  ;;  %s4151_s20 = sld [smem:[#allocation66_spill]] }
 0x2b2   : > { %v1232_v13 = vmul.f32 %v4130_v12, %v1125_v55  ;;  %v4131_v58 = vstv %s3527_s24  ;;  %v4132_v59 = vstv %s3533_s19  ;;  %v4133_v14 = vstv %s3535_s21  ;;  %s2379_s24 = scalar_lea.sflag [#allocation6], %s383_s30  ;;  %s3101_s21 = smov [#allocation9]  }
 0x2b3   : > { %v1203_v11 = vpop.f32.mrb[12].mxu1  ;;  %v1263_v48 = vmul.f32 %v4131_v58, %v1125_v55  ;;  %v1294_v60 = vmul.f32 %v4132_v59, %v1125_v55  ;;  %v1325_v15 = vmul.f32 %v4133_v14, %v1125_v55  ;;  %v4137_v17 = vstv %s3541_s2  ;;  %s4146_s2 = smov 122   ;;  %s3016_s16 = sshll.u32 %s3101_s21, 4  ;;  %s3017_s16 = int_to_ptr.vmem [resolvable:$false] %s3016_s16 }
 0x2b4   : > { %v2722_v39 = vpop.f32.mrb[13].mxu1  ;;  %v1356_v43 = vmul.f32 %v4137_v17, %v1125_v55  ;;  %v4138_v61 = vstv %s3543_s1  ;;  %v4139_v63 = vstv %s3549_s5  ;;  %v4140_v1 = vstv %s3551_s6  ;;  %s4145_s1 = smov 119   ;;  %s4147_s5 = smov 116  }
 0x2b5   : > { %v1387_v62 = vmul.f32 %v4138_v61, %v1125_v55  ;;  %v1418_v18 = vmul.f32 %v4139_v63, %v1125_v55  ;;  %v1449_v21 = vmul.f32 %v4140_v1, %v1125_v55  ;;  %v1233_v22 = vadd.f32 %v1232_v13, %v1229_v38  ;;  %s4148_s6 = smov 113  }
 0x2b6   : > { %v1295_v29 = vadd.f32 %v1294_v60, %v1291_v40  ;;  %v1326_v56 = vadd.f32 %v1325_v15, %v1322_v41  ;;  %v4141_v2 = vstv %s3557_s12  ;;  %v1357_v5 = vadd.f32 %v1356_v43, %v1353_v53  ;;  %s3018_s12 = scalar_lea.vmem %s3017_s16, 256 }
 0x2b7   : > { %v1236_v3 = vmul.f32 %v4141_v2, %v1203_v11  ;;  %v1388_v30 = vadd.f32 %v1387_v62, %v1384_v54  ;;  %v1419_v31 = vadd.f32 %v1418_v18, %v1415_v10  ;;  %v1450_v32 = vadd.f32 %v1449_v21, %v1446_v45 }
 0x2b8   : > { %v4142_v19 = vstv %s4134_s0  ;;  %v4143_v20 = vstv %s4135_s25  ;;  %v4144_v23 = vstv %s4136_s15  ;;  %v1391_v34 = vmul.f32 %v1390_v57, %v1203_v11  ;;  %s4155_s25 = sld [smem:[#allocation67_spill]]  ;;  %s4156_s15 = sld [smem:[#allocation21_spill]] }
 0x2b9   : > { %v1298_v33 = vmul.f32 %v4142_v19, %v1203_v11  ;;  %v1329_v0 = vmul.f32 %v4143_v20, %v1203_v11  ;;  %v1360_v24 = vmul.f32 %v4144_v23, %v1203_v11  ;;  %v1422_v25 = vmul.f32 %v1421_v4, %v1203_v11 }
 0x2ba   : > { %v1453_v35 = vmul.f32 %v1452_v47, %v1203_v11  ;;  %v1237_v36 = vadd.f32 %v1236_v3, %v1233_v22  ;;  %v1264_v37 = vadd.f32 %v1263_v48, %v1260_v42  ;;  %v1392_v8 = vadd.f32 %v1391_v34, %v1388_v30 }
 0x2bb   : > { %v1299_v26 = vadd.f32 %v1298_v33, %v1295_v29  ;;  %v1330_v6 = vadd.f32 %v1329_v0, %v1326_v56  ;;  %v1361_v7 = vadd.f32 %v1360_v24, %v1357_v5  ;;  %v1423_v27 = vadd.f32 %v1422_v25, %v1419_v31 }
 0x2bc   : > { %v1454_v9 = vadd.f32 %v1453_v35, %v1450_v32  ;;  %v1267_v28 = vmul.f32 %v1266_v46, %v1203_v11  ;;  %v1530_v57 = vsub.s32 1, %v3401_v49  ;;  %v1465_v4 = vsub.s32 0, %v3401_v49 }
 0x2bd   : > { %v1693_v47 = vsub.s32 2, %v3401_v49  ;;  %v1806_v42 = vsub.s32 3, %v3401_v49  ;;  %v1919_v54 = vsub.s32 4, %v3401_v49  ;;  %v2032_v10 = vsub.s32 5, %v3401_v49 }
 0x2be   : > { %v1268_v51 = vadd.f32 %v1267_v28, %v1264_v37  ;;  %v2145_v45 = vsub.s32 6, %v3401_v49  ;;  %v1531_v55 = vrot.slane %v3406_v50, %v1530_v57  ;;  %v1466_v12 = vrot.slane %v3406_v50, %v1465_v4  ;;  %p4158_p4 = scmp.ne.s32.totalorder %s4156_s15, 0 }
 0x2bf   : > { %v1694_v13 = vrot.slane %v3406_v50, %v1693_v47  ;;  %v1807_v58 = vrot.slane %v3406_v50, %v1806_v42  ;;  %v1920_v48 = vrot.slane %v3406_v50, %v1919_v54  ;;  %v2033_v59 = vrot.slane %v3406_v50, %v2032_v10 }
 0x2c0   : > { %v1455_v38 = vadd.f32 %v1268_v51, %v1237_v36  ;;  %v2146_v60 = vrot.slane %v3406_v50, %v2145_v45  ;;  %v3100_v54 = vmov 65535  }
 0x2c1   : > { %v1600_v10 = vsel %vm1598_vm5, 4294967295, %v3100_v54 }
 0x2c2   : > { %v1456_v40 = vadd.f32 %v1455_v38, %v1299_v26 }
 0x2c4   : > { %v1457_v41 = vadd.f32 %v1456_v40, %v1330_v6 }
 0x2c6   : > { %v1458_v53 = vadd.f32 %v1457_v41, %v1361_v7 }
 0x2c8   : > { %v1459_v46 = vadd.f32 %v1458_v53, %v1392_v8 }
 0x2ca   : > { %v1460_v11 = vadd.f32 %v1459_v46, %v1423_v27  ;;  %v2576_v46 = vld [vmem:[%s4151_s20 + $0x2] sm:$0x3] }
 0x2cc   : > { %v1461_v14 = vadd.f32 %v1460_v11, %v1454_v9 }
 0x2ce   : > { %v1532_v15 = vmul.f32 %v1531_v55, %v1461_v14  ;;  %v1467_v16 = vmul.f32 %v1466_v12, %v1461_v14  ;;  %v1695_v49 = vmul.f32 %v1694_v13, %v1461_v14  ;;  %v1808_v39 = vmul.f32 %v1807_v58, %v1461_v14 }
 0x2cf   : > { %v1921_v17 = vmul.f32 %v1920_v48, %v1461_v14  ;;  %v2034_v43 = vmul.f32 %v2033_v59, %v1461_v14  ;;  %v2147_v61 = vmul.f32 %v2146_v60, %v1461_v14  ;;  %v2260_v62 = vmul.f32 %v3410_v52, %v1461_v14  ;;  %v1527_v60 = vld [vmem:[%s4151_s20] sm:$0x3] }
 0x2d0   : > { %v1533_v63 = vadd.f32 %v1532_v15, %v1268_v51  ;;  %v1468_v18 = vadd.f32 %v1467_v16, %v1237_v36  ;;  %v1696_v1 = vadd.f32 %v1695_v49, %v1299_v26  ;;  %v1809_v21 = vadd.f32 %v1808_v39, %v1330_v6 }
 0x2d1   : > { %v1922_v22 = vadd.f32 %v1921_v17, %v1361_v7  ;;  %v2035_v29 = vadd.f32 %v2034_v43, %v1392_v8  ;;  %v2148_v56 = vadd.f32 %v2147_v61, %v1423_v27  ;;  %v2261_v2 = vadd.f32 %v2260_v62, %v1454_v9 }
 0x2d2   : > { %2898 = vtanh.f32 %v1533_v63  ;;  %v3782_v55 = vsel %vm1599_vm6, %v1600_v10, 0  ;;  %v4152_v59 = vmov 0.0  }
 0x2d3   : > { %2900 = vtanh.f32 %v1468_v18  ;;  %v1649_v14 = vand.u32 %v3782_v55, %v1527_v60 }
 0x2d4   : > { %2902 = vtanh.f32 %v1696_v1 }
 0x2d5   : > { %2904 = vtanh.f32 %v1809_v21 }
 0x2d6   : > { %2906 = vtanh.f32 %v1922_v22 }
 0x2dc   : > { %v2899_v50 = vpop.eup %2898 }
 0x2dd   : > { %v2901_v3 = vpop.eup %2900  ;;  %v1535_v5 = vmul.f32 1.442695, %v2899_v50 }
 0x2de   : > { %v2903_v30 = vpop.eup %2902  ;;  %v1470_v31 = vmul.f32 1.442695, %v2901_v3 }
 0x2df   : > { %v2905_v32 = vpop.eup %2904  ;;  %2908 = vpow2.f32 %v1535_v5  ;;  %v1698_v52 = vmul.f32 1.442695, %v2903_v30 }
 0x2e0   : > { %2910 = vpow2.f32 %v1470_v31  ;;  %v1811_v19 = vmul.f32 1.442695, %v2905_v32  ;;  %v2907_v33 = vpop.eup %2906 }
 0x2e1   : > { %2912 = vpow2.f32 %v1698_v52  ;;  %v1924_v20 = vmul.f32 1.442695, %v2907_v33 }
 0x2e2   : > { %2914 = vpow2.f32 %v1811_v19 }
 0x2e3   : > { %2916 = vpow2.f32 %v1924_v20 }
 0x2e4   : > { %2918 = vtanh.f32 %v2035_v29 }
 0x2e5   : > { %2920 = vtanh.f32 %v2148_v56 }
 0x2e6   : > { %2922 = vtanh.f32 %v2261_v2 }
 0x2e9   : > { %v2909_v0 = vpop.eup %2908 }
 0x2ea   : > { %v2911_v23 = vpop.eup %2910  ;;  %v1537_v24 = vsel %vm1472_vm4, %v2909_v0, 0.0 }
 0x2eb   : > { %v3742_v34 = vpop.eup %2912  ;;  %1538 = vadd.xlane.f32.xlu0 %v1537_v24  ;;  %v1473_v25 = vsel %vm1472_vm4, %v2911_v23, 0.0 }
 0x2ec   : > { %1474 = vadd.xlane.f32.xlu1 %v1473_v25  ;;  %v1700_v35 = vsel %vm1472_vm4, %v3742_v34, 0.0  ;;  %v3747_v36 = vpop.eup %2914 }
 0x2ed   : > { %v1813_v37 = vsel %vm1472_vm4, %v3747_v36, 0.0  ;;  %v3751_v26 = vpop.eup %2916 }
 0x2ee   : > { %v1926_v6 = vsel %vm1472_vm4, %v3751_v26, 0.0  ;;  %v2919_v7 = vpop.eup %2918 }
 0x2ef   : > { %1701 = vadd.xlane.f32.xlu0 %v1700_v35  ;;  %v2037_v8 = vmul.f32 1.442695, %v2919_v7  ;;  %v2921_v27 = vpop.eup %2920 }
 0x2f0   : > { %v2150_v9 = vmul.f32 1.442695, %v2921_v27  ;;  %v2923_v28 = vpop.eup %2922 }
 0x2f1   : > { %2924 = vpow2.f32 %v2037_v8  ;;  %v2263_v51 = vmul.f32 1.442695, %v2923_v28 }
 0x2f2   : > { %2926 = vpow2.f32 %v2150_v9 }
 0x2f3   : > { %1814 = vadd.xlane.f32.xlu0 %v1813_v37  ;;  %2928 = vpow2.f32 %v2263_v51 }
 0x2f7   : > { %1927 = vadd.xlane.f32.xlu0 %v1926_v6 }
 0x2fb   : > { %v3759_v38 = vpop.eup %2924 }
 0x2fc   : > { %v2039_v40 = vsel %vm1472_vm4, %v3759_v38, 0.0  ;;  %v3763_v41 = vpop.eup %2926 }
 0x2fd   : > { %1819 = vrot.lane.b32.xlu1 %v3392_v44, %s4145_s1  ;;  %v2152_v57 = vsel %vm1472_vm4, %v3763_v41, 0.0  ;;  %v3767_v53 = vpop.eup %2928  ;;  %s2599_s1 = sshll.u32 %s4154_s18, 7 }
 0x2fe   : > { %v2265_v4 = vsel %vm1472_vm4, %v3767_v53, 0.0 }
 0x30d   : > { %1706 = vrot.lane.b32.xlu0 %v3392_v44, %s4146_s2  ;;  %s385_s2 = scalar_lea.vmem [#allocation9], %s2481_s4 }
 0x321   : > { %2040 = vadd.xlane.f32.xlu1 %v2039_v40 }
 0x325   : > { %2153 = vadd.xlane.f32.xlu1 %v2152_v57 }
 0x32c   : > { %2266 = vadd.xlane.f32.xlu0 %v2265_v4 }
 0x336   : > { %1932 = vrot.lane.b32.xlu1 %v3392_v44, %s4147_s5  ;;  %s2392_s5 = sshll.u32 %s385_s2, 4  ;;  %s3894_s5 = int_to_ptr.vmem [resolvable:$true] %s2392_s5 }
 0x337   : > { %s3012_s23 = scalar_lea.vmem %s3894_s5, 128  ;;  %p3019_p7 = scmp.lt.s32.totalorder %s3894_s5, %s3017_s16 }
 0x338   : > { %p3013_p1 = scmp.ne.s32.totalorder %s3894_s5, %s3012_s23  ;;  %p3020_p10 = scmp.lt.s32.totalorder %s3018_s12, %s3012_s23 }
 0x33a   : > { %2045 = vrot.lane.b32.xlu1 %v3392_v44, %s4148_s6  ;;  %p3014_p5 = pnand %p3013_p1, %p4158_p4  ;;  %p3021_p11 = por %p3020_p10, %p3019_p7 }
 0x33c   : > { %p3015_p6 = pneg %p3014_p5 }
 0x33e   : > { %2158 = vrot.lane.b32.xlu1 %v3392_v44, %s4149_s9  ;;  %p3022_p0 = pnand %p3021_p11, %p3015_p6 }
 0x342   : > { %2271 = vrot.lane.b32.xlu1 %v3392_v44, %s4150_s17  ;;  %v1603_v44 = vand.u32 %v2576_v46, %v3782_v55  ;;  %s4157_s17 = sld [smem:[#allocation68_spill]] }
 0x348   : > { %s3892_s19 = scalar_lea.hbm %s4157_s17, %s2599_s1 }
 0x378   : > { %v1539_v47 = vpop.xlane.xlu0 %1538 }
 0x379   : > { %2930 = vrcp.f32 %v1539_v47  ;;  %v1475_v42 = vpop.xlane.xlu1 %1474 }
 0x37a   : > { %2932 = vrcp.f32 %v1475_v42 }
 0x37c   : > { %v1702_v15 = vpop.xlane.xlu0 %1701 }
 0x37d   : > { %2934 = vrcp.f32 %v1702_v15  ;;  %v1820_v39 = vpop.permute.xlu1 %1819 }
 0x37e   : > { %v1825_v52 = vsel %vm416_vm1, %v1820_v39, 0 }
 0x380   : > { %v1815_v16 = vpop.xlane.xlu0 %1814 }
 0x381   : > { %2936 = vrcp.f32 %v1815_v16 }
 0x383   : > { %v2931_v45 = vpop.eup %2930 }
 0x384   : > { %v2933_v11 = vpop.eup %2932  ;;  %v1541_v12 = vmul.f32 %v2931_v45, %v2909_v0  ;;  %v1928_v49 = vpop.xlane.xlu0 %1927 }
 0x385   : > { %v1477_v13 = vmul.f32 %v2933_v11, %v2911_v23  ;;  %2938 = vrcp.f32 %v1928_v49  ;;  %v2586_v49 = vld [vmem:[%s4151_s20 + $0x8] sm:$0x3] }
 0x386   : > { %v1542_v58 = vpack.c.bf16 %v1541_v12, %v1541_v12 }
 0x387   : > { %v1479_v48 = vpack.c.bf16 %v1477_v13, %v1477_v13  ;;  %v2935_v18 = vpop.eup %2934 }
 0x388   : > { %2732 = vmatmul.mubr.msk.bf16.vlgmr.msra.gmra.mrb[16].mxu1 %vm1472_vm4, %v1542_v58  ;;  %v1707_v17 = vpop.permute.xlu0 %1706  ;;  %v1704_v5 = vmul.f32 %v2935_v18, %v3742_v34  ;;  %v2583_v58 = vld [vmem:[%s4151_s20 + $0x6] sm:$0x3]  ;;  %v2589_v18 = vld [vmem:[%s4151_s20 + $0xa] sm:$0x3] }
 0x389   : > { %2726 = vmatmul.mubr.msk.bf16.vlgmr.msra.gmra.mrb[16].mxu0 %vm1472_vm4, %v1479_v48  ;;  %2743 = vmatprep.mubr.msk.bf16.mxu1 %vm3092_vm0, %v4152_v59  ;;  %v1712_v29 = vsel %vm416_vm1, %v1707_v17, 0  ;;  %v1874_v48 = vand.u32 %v2583_v58, %v3782_v55  ;;  %v1987_v17 = vand.u32 %v2586_v49, %v3782_v55 }
 0x38a   : > { %2736 = vmatpush3.bf16.msra.mxu0 %v1603_v44  ;;  %2737 = vmatprep.mubr.msk.bf16.mxu0 %vm3092_vm0, %v4152_v59  ;;  %v1705_v30 = vpack.c.bf16 %v1704_v5, %v1704_v5 }
 0x38b   : > { %2747 = vmatprep.subr.bf16.mxu0 %v4152_v59  ;;  %2742 = vmatpush3.bf16.msra.mxu1 %v1649_v14  ;;  %v2937_v31 = vpop.eup %2936 }
 0x38c   : > { %2753 = vmatprep.subr.bf16.mxu1 %v4152_v59  ;;  %v1817_v19 = vmul.f32 %v2937_v31, %v3747_v36 }
 0x38e   : > { %v1818_v20 = vpack.c.bf16 %v1817_v19, %v1817_v19  ;;  %v2595_v19 = vld [vmem:[%s4151_s20 + $0xe] sm:$0x3] }
 0x38f   : > { %v2939_v0 = vpop.eup %2938 }
 0x390   : > { %v1930_v24 = vmul.f32 %v2939_v0, %v3751_v26 }
 0x392   : > { %v1931_v25 = vpack.c.bf16 %v1930_v24, %v1930_v24 }
 0x3ae   : > { %v2041_v50 = vpop.xlane.xlu1 %2040 }
 0x3af   : > { %2940 = vrcp.f32 %v2041_v50  ;;  %v2592_v50 = vld [vmem:[%s4151_s20 + $0xc] sm:$0x3] }
 0x3b0   : > { %v2213_v5 = vand.u32 %v2592_v50, %v3782_v55 }
 0x3b2   : > { %v2154_v32 = vpop.xlane.xlu1 %2153 }
 0x3b3   : > { %2942 = vrcp.f32 %v2154_v32 }
 0x3b6   : > { %v1933_v33 = vpop.permute.xlu1 %1932 }
 0x3b7   : > { %v1938_v23 = vsel %vm416_vm1, %v1933_v33, 0 }
 0x3b9   : > { %v2941_v35 = vpop.eup %2940  ;;  %v2267_v6 = vpop.xlane.xlu0 %2266 }
 0x3ba   : > { %v2046_v34 = vpop.permute.xlu1 %2045  ;;  %v2043_v37 = vmul.f32 %v2941_v35, %v3759_v38  ;;  %2944 = vrcp.f32 %v2267_v6 }
 0x3bb   : > { %v2051_v36 = vsel %vm416_vm1, %v2046_v34, 0 }
 0x3bc   : > { %v2044_v7 = vpack.c.bf16 %v2043_v37, %v2043_v37 }
 0x3bd   : > { %v2943_v8 = vpop.eup %2942 }
 0x3be   : > { %v2159_v26 = vpop.permute.xlu1 %2158  ;;  %v2156_v9 = vmul.f32 %v2943_v8, %v3763_v41  ;;  %v2580_v41 = vld [vmem:[%s4151_s20 + $0x4] sm:$0x3] }
 0x3bf   : > { %v2164_v27 = vsel %vm416_vm1, %v2159_v26, 0  ;;  %v1761_v47 = vand.u32 %v2580_v41, %v3782_v55 }
 0x3c0   : > { %v2157_v51 = vpack.c.bf16 %v2156_v9, %v2156_v9 }
 0x3c2   : > { %v2272_v28 = vpop.permute.xlu1 %2271 }
 0x3c3   : > { %v2277_v40 = vsel %vm416_vm1, %v2272_v28, 0 }
 0x3c4   : > { %v2945_v38 = vpop.eup %2944 }
 0x3c5   : > { %v2269_v57 = vmul.f32 %v2945_v38, %v3767_v53 }
 0x3c7   : > { %v2270_v4 = vpack.c.bf16 %v2269_v57, %v2269_v57 }
 0x45b   : > { %v1586_v43 = vpop.f32.mrb[16].mxu1 }
 0x45c   : > { %v1520_v61 = vpop.f32.mrb[16].mxu0  ;;  %v1592_v62 = vpack.c.bf16 %v1586_v43, %v1586_v43  ;;  %v2733_v63 = vpop.f32.mrb[17].mxu1 }
 0x45d   : > { %v1526_v1 = vpack.c.bf16 %v1520_v61, %v1520_v61  ;;  %v2727_v21 = vpop.f32.mrb[17].mxu0  ;;  %v1589_v22 = vpop.f32.mrb[18].mxu1 }
 0x45e   : > { %v1523_v56 = vpop.f32.mrb[18].mxu0  ;;  %v2734_v2 = vpop.f32.mrb[19].mxu1  ;;  %2738 = vmatmul.mubr.msk.bf16.vlgmr.msra.gmra.mrb[20].mxu0 %vm584_vm3, %v1592_v62  ;;  %v2100_v21 = vand.u32 %v2589_v18, %v3782_v55 }
 0x45f   : > { %v2728_v3 = vpop.f32.mrb[19].mxu0  ;;  %2744 = vmatmul.mubr.msk.bf16.vlgmr.msra.gmra.mrb[20].mxu1 %vm584_vm3, %v1526_v1  ;;  %2748 = vmatpush3.bf16.msra.mxu0 %v1712_v29 }
 0x460   : > { %2749 = vmatprep.mubr.msk.bf16.mxu0 %vm3092_vm0, %v4152_v59  ;;  %2759 = vmatprep.subr.bf16.mxu0 %v4152_v59 }
 0x461   : > { %2755 = vmatprep.mubr.msk.bf16.mxu1 %vm3092_vm0, %v4152_v59  ;;  %2754 = vmatpush3.bf16.msra.mxu1 %v1761_v47 }
 0x462   : > { %2765 = vmatprep.subr.bf16.mxu1 %v4152_v59 }
 0x466   : > { %2750 = vmatmul.mubr.msk.bf16.vlgmr.msra.gmra.mrb[24].mxu0 %vm1472_vm4, %v1705_v30 }
 0x467   : > { %2760 = vmatpush3.bf16.msra.mxu0 %v1825_v52  ;;  %2761 = vmatprep.mubr.msk.bf16.mxu0 %vm3092_vm0, %v4152_v59 }
 0x468   : > { %2771 = vmatprep.subr.bf16.mxu0 %v4152_v59 }
 0x46e   : > { %2762 = vmatmul.mubr.msk.bf16.vlgmr.msra.gmra.mrb[28].mxu0 %vm1472_vm4, %v1818_v20  ;;  %v2326_v20 = vand.u32 %v2595_v19, %v3782_v55 }
 0x46f   : > { %2772 = vmatpush3.bf16.msra.mxu0 %v1938_v23  ;;  %2773 = vmatprep.mubr.msk.bf16.mxu0 %vm3092_vm0, %v4152_v59 }
 0x470   : > { %2783 = vmatprep.subr.bf16.mxu0 %v4152_v59 }
 0x476   : > { %2774 = vmatmul.mubr.msk.bf16.vlgmr.msra.gmra.mrb[32].mxu0 %vm1472_vm4, %v1931_v25 }
 0x477   : > { %2784 = vmatpush3.bf16.msra.mxu0 %v2051_v36  ;;  %2785 = vmatprep.mubr.msk.bf16.mxu0 %vm3092_vm0, %v4152_v59 }
 0x478   : > { %2795 = vmatprep.subr.bf16.mxu0 %v4152_v59 }
 0x47e   : > { %2786 = vmatmul.mubr.msk.bf16.vlgmr.msra.gmra.mrb[36].mxu0 %vm1472_vm4, %v2044_v7 }
 0x47f   : > { %2796 = vmatpush3.bf16.msra.mxu0 %v2164_v27  ;;  %2797 = vmatprep.mubr.msk.bf16.mxu0 %vm3092_vm0, %v4152_v59 }
 0x480   : > { %2807 = vmatprep.subr.bf16.mxu0 %v4152_v59 }
 0x486   : > { %2798 = vmatmul.mubr.msk.bf16.vlgmr.msra.gmra.mrb[40].mxu0 %vm1472_vm4, %v2157_v51 }
 0x487   : > { %2808 = vmatpush3.bf16.msra.mxu0 %v2277_v40  ;;  %2809 = vmatprep.mubr.msk.bf16.mxu0 %vm3092_vm0, %v4152_v59 }
 0x48e   : > { %2810 = vmatmul.mubr.msk.bf16.vlgmr.msra.gmra.mrb[44].mxu0 %vm1472_vm4, %v2270_v4 }
 0x531   : > { %v1639_v42 = vpop.f32.mrb[20].mxu0 }
 0x532   : > { %v1685_v54 = vpop.f32.mrb[20].mxu1  ;;  %v2739_v10 = vpop.f32.mrb[21].mxu0 }
 0x533   : > { %v3841_v45 = vadd.f32 %v1685_v54, %v1639_v42  ;;  %v2745_v46 = vpop.f32.mrb[21].mxu1  ;;  %v1642_v11 = vpop.f32.mrb[22].mxu0 }
 0x534   : > { %v1688_v53 = vpop.f32.mrb[22].mxu1  ;;  %v2740_v12 = vpop.f32.mrb[23].mxu0 }
 0x535   : > { %v2746_v13 = vpop.f32.mrb[23].mxu1 }
 0x539   : > { %v1748_v44 = vpop.f32.mrb[24].mxu0 }
 0x53a   : > { %v1754_v60 = vpack.c.bf16 %v1748_v44, %v1748_v44  ;;  %v2751_v14 = vpop.f32.mrb[25].mxu0 }
 0x53b   : > { %v1751_v15 = vpop.f32.mrb[26].mxu0 }
 0x53c   : > { %v2752_v16 = vpop.f32.mrb[27].mxu0  ;;  %2756 = vmatmul.mubr.msk.bf16.vlgmr.msra.gmra.mrb[24].mxu1 %vm584_vm3, %v1754_v60 }
 0x53d   : > { %2766 = vmatpush3.bf16.msra.mxu1 %v1874_v48  ;;  %2767 = vmatprep.mubr.msk.bf16.mxu1 %vm3092_vm0, %v4152_v59  ;;  %v2597_v48 = vld [vmem:[%s4155_s25] ss:$0 sm:$0xff] }
 0x53e   : > { %2777 = vmatprep.subr.bf16.mxu1 %v4152_v59 }
 0x541   : > { %v1861_v39 = vpop.f32.mrb[28].mxu0 }
 0x542   : > { %v1867_v43 = vpack.c.bf16 %v1861_v39, %v1861_v39  ;;  %v2763_v61 = vpop.f32.mrb[29].mxu0 }
 0x543   : > { %v1864_v62 = vpop.f32.mrb[30].mxu0 }
 0x544   : > { %v2764_v63 = vpop.f32.mrb[31].mxu0  ;;  %2768 = vmatmul.mubr.msk.bf16.vlgmr.msra.gmra.mrb[28].mxu1 %vm584_vm3, %v1867_v43 }
 0x545   : > { %2778 = vmatpush3.bf16.msra.mxu1 %v1987_v17  ;;  %2779 = vmatprep.mubr.msk.bf16.mxu1 %vm3092_vm0, %v4152_v59 }
 0x546   : > { %2789 = vmatprep.subr.bf16.mxu1 %v4152_v59 }
 0x549   : > { %v1974_v1 = vpop.f32.mrb[32].mxu0 }
 0x54a   : > { %v1980_v22 = vpack.c.bf16 %v1974_v1, %v1974_v1  ;;  %v2775_v29 = vpop.f32.mrb[33].mxu0 }
 0x54b   : > { %v1977_v56 = vpop.f32.mrb[34].mxu0 }
 0x54c   : > { %v2776_v2 = vpop.f32.mrb[35].mxu0  ;;  %2780 = vmatmul.mubr.msk.bf16.vlgmr.msra.gmra.mrb[32].mxu1 %vm584_vm3, %v1980_v22 }
 0x54d   : > { %2790 = vmatpush3.bf16.msra.mxu1 %v2100_v21  ;;  %2791 = vmatprep.mubr.msk.bf16.mxu1 %vm3092_vm0, %v4152_v59 }
 0x54e   : > { %2801 = vmatprep.subr.bf16.mxu1 %v4152_v59 }
 0x551   : > { %v2087_v3 = vpop.f32.mrb[36].mxu0 }
 0x552   : > { %v2093_v30 = vpack.c.bf16 %v2087_v3, %v2087_v3  ;;  %v2787_v31 = vpop.f32.mrb[37].mxu0 }
 0x553   : > { %v2090_v32 = vpop.f32.mrb[38].mxu0 }
 0x554   : > { %v2788_v52 = vpop.f32.mrb[39].mxu0  ;;  %2792 = vmatmul.mubr.msk.bf16.vlgmr.msra.gmra.mrb[36].mxu1 %vm584_vm3, %v2093_v30 }
 0x555   : > { %2802 = vmatpush3.bf16.msra.mxu1 %v2213_v5  ;;  %2803 = vmatprep.mubr.msk.bf16.mxu1 %vm3092_vm0, %v4152_v59 }
 0x556   : > { %2813 = vmatprep.subr.bf16.mxu1 %v4152_v59 }
 0x559   : > { %v2200_v33 = vpop.f32.mrb[40].mxu0 }
 0x55a   : > { %v2206_v0 = vpack.c.bf16 %v2200_v33, %v2200_v33  ;;  %v2799_v23 = vpop.f32.mrb[41].mxu0 }
 0x55b   : > { %v2203_v24 = vpop.f32.mrb[42].mxu0 }
 0x55c   : > { %v2800_v34 = vpop.f32.mrb[43].mxu0  ;;  %2804 = vmatmul.mubr.msk.bf16.vlgmr.msra.gmra.mrb[40].mxu1 %vm584_vm3, %v2206_v0 }
 0x55d   : > { %2814 = vmatpush3.bf16.msra.mxu1 %v2326_v20  ;;  %2815 = vmatprep.mubr.msk.bf16.mxu1 %vm3092_vm0, %v4152_v59 }
 0x561   : > { %v2313_v25 = vpop.f32.mrb[44].mxu0 }
 0x562   : > { %v2319_v35 = vpack.c.bf16 %v2313_v25, %v2313_v25  ;;  %v2811_v36 = vpop.f32.mrb[45].mxu0 }
 0x563   : > { %v2316_v37 = vpop.f32.mrb[46].mxu0 }
 0x564   : > { %v2812_v6 = vpop.f32.mrb[47].mxu0  ;;  %2816 = vmatmul.mubr.msk.bf16.vlgmr.msra.gmra.mrb[44].mxu1 %vm584_vm3, %v2319_v35 }
 0x60f   : > { %v1797_v26 = vpop.f32.mrb[24].mxu1 }
 0x610   : > { %v1803_v55 = vadd.f32 %v1797_v26, %v3841_v45  ;;  %v2757_v7 = vpop.f32.mrb[25].mxu1 }
 0x611   : > { %v1800_v8 = vpop.f32.mrb[26].mxu1 }
 0x612   : > { %v2758_v27 = vpop.f32.mrb[27].mxu1 }
 0x617   : > { %v1910_v9 = vpop.f32.mrb[28].mxu1 }
 0x618   : > { %v1916_v28 = vadd.f32 %v1910_v9, %v1803_v55  ;;  %v2769_v51 = vpop.f32.mrb[29].mxu1 }
 0x619   : > { %v1913_v38 = vpop.f32.mrb[30].mxu1 }
 0x61a   : > { %v2770_v40 = vpop.f32.mrb[31].mxu1 }
 0x61f   : > { %v2023_v59 = vpop.f32.mrb[32].mxu1 }
 0x620   : > { %v2029_v57 = vadd.f32 %v2023_v59, %v1916_v28  ;;  %v2781_v4 = vpop.f32.mrb[33].mxu1 }
 0x621   : > { %v2026_v41 = vpop.f32.mrb[34].mxu1 }
 0x622   : > { %v2782_v47 = vpop.f32.mrb[35].mxu1 }
 0x627   : > { %v2136_v42 = vpop.f32.mrb[36].mxu1 }
 0x628   : > { %v2142_v54 = vadd.f32 %v2136_v42, %v2029_v57  ;;  %v2793_v10 = vpop.f32.mrb[37].mxu1 }
 0x629   : > { %v2139_v46 = vpop.f32.mrb[38].mxu1 }
 0x62a   : > { %v2794_v45 = vpop.f32.mrb[39].mxu1 }
 0x62f   : > { %v2249_v11 = vpop.f32.mrb[40].mxu1 }
 0x630   : > { %v2255_v53 = vadd.f32 %v2249_v11, %v2142_v54  ;;  %v2805_v12 = vpop.f32.mrb[41].mxu1 }
 0x631   : > { %v2252_v13 = vpop.f32.mrb[42].mxu1 }
 0x632   : > { %v2806_v58 = vpop.f32.mrb[43].mxu1 }
 0x637   : > { %v2362_v44 = vpop.f32.mrb[44].mxu1 }
 0x638   : > { %v2368_v60 = vadd.f32 %v2362_v44, %v2255_v53  ;;  %v2817_v14 = vpop.f32.mrb[45].mxu1 }
 0x639   : > { %v2365_v15 = vpop.f32.mrb[46].mxu1 }
 0x63a   : > { %v2376_v16 = vadd.f32 %v2597_v48, %v2368_v60  ;;  %v2818_v49 = vpop.f32.mrb[47].mxu1 }
 0x63c   : > { %2377 = vst.msk [vmem:[%s385_s2] sm:$0xff] %vm412_vm2, %v2376_v16 }
 0x63d   : > { %3025 = shalt.err (!%p3022_p0)
}
 0x63e   : > { %s3026_s7 = scalar_lea.hbm %s3892_s19, 128  ;;  %s3030_s8 = scalar_lea.hbm %s4157_s17, 256 }
 0x63f   : > { %p3027_p2 = scmp.ne.s32.totalorder %s3892_s19, %s3026_s7  ;;  %p3031_p9 = scmp.lt.u32.totalorder %s3892_s19, %s4157_s17 }
 0x640   : > { %p3032_p12 = scmp.lt.u32.totalorder %s3030_s8, %s3026_s7  ;;  %p3034_p1 = scmp.lt.u32.totalorder %s3026_s7, %s3892_s19 }
 0x641   : > { %p3028_p8 = pnand %p3027_p2, %p4158_p4 }
 0x642   : > { %p3033_p13 = por %p3032_p12, %p3031_p9 }
 0x643   : > { %p3029_p3 = pneg %p3028_p8 }
 0x644   : > { %p3035_p5 = por %p3034_p1, %p3033_p13 }
 0x646   : > { %p3036_p6 = pnand %p3035_p5, %p3029_p3 }
 0x648   : > { %3039 = shalt.err (!%p3036_p6)
}
 0x649   : > { %2827 = dma.vmem_to_hbm [thread:$0]  (%p4158_p4), %s3894_s5, 128, %s3892_s19, %s2379_s24  }
 0x64a PF: > { %s4159_s13 = sld [smem:[#allocation17_spill]]  ;;  %s4160_s22 = sld [smem:[#allocation14_spill]] }
 0x64b   : > { %s4161_s27 = sld [smem:[#allocation22_spill]] }
 0x650   : > { %p2844_p7 = scmp.ge.s32.totalorder %s4159_s13, 2  ;;  %s2404_s14 = sand.u32 1, %s4160_s22  }
 0x651   : > { %p4162_p10 = scmp.ne.s32.totalorder %s4161_s27, 0  ;;  %s2405_s29 = scalar_lea.sflag [#allocation6], %s2404_s14 }
 0x653   : > { %p2837_p11 = pnand %p2844_p7, %p4162_p10 }
 0x655   : > { %3067 = dma.done.wait (!%p2837_p11), %s2405_s29, 128  }
 0x656   : > { %3069 = vsyncadd (!%p2837_p11), %s2405_s29, 4294967168  ;;  %s4163_s30 = sld [smem:[#allocation19_spill]]  ;;  %s4164_s27 = sld [smem:[#allocation15_spill]] }
 0x657   : > { %s4165_s28 = sld [smem:[#allocation16_spill]]  ;;  %s4166_s29 = sld [smem:[#allocation20_spill]] }
 0x65c   : > { %p27_p0 = scmp.ge.s32.totalorder %s4163_s30, 4  }
 0x65e   :  { %29 = sbr.rel (!%p27_p0) target bundleno = 23 (0x17), region = 111 }
 0x665   :  { %2410 = vsyncpa [#allocation5], 1 }
 0x666   :  { %2412 = vsyncpa [#allocation5 + $0x1], 1 }
 0x667   :  { %2413 = vsyncpa [#allocation8], 1 }
 0x668   :  { %2414 = vsyncpa [#allocation6], 1 }
 0x669   :  { %2416 = vsyncpa [#allocation6 + $0x1], 1 }

</bundles_post_ra>
